<compile_context>
chip_gen: v7x
topology: tpu7x:2x2x1
jax: 0.10.0
libtpu: 0.0.40
codegen_flags: <defaults>
</compile_context>

<pallas_src>
import math

import jax
import jax.numpy as jnp
from jax.experimental import pallas as pl
from jax.experimental.pallas import tpu as pltpu  # noqa: F401  (TPU backend)

# ---------------- model / problem dimensions (small, consistent w/ module) ---
B, S = 2, 8               # batch, sequence length
QUERY_DIM = 32            # query_dim  (!= hidden_dim so self.proj is a Linear)
HIDDEN_DIM = 64           # hidden_dim
NUM_HEADS = 8
HEAD_DIM = HIDDEN_DIM // NUM_HEADS
FFN_MULT = 4
FFN_DIM = HIDDEN_DIM * FFN_MULT
LN_EPS = 1e-5

BS = B * S                       # 16 tokens per call
R = NUM_HEADS * BS               # 128 = (head, batch, seq) rows of the fused attention core
NEG_BIG = -1e30


# --------------------------------- kernel ------------------------------------
def _layer_norm(x, gamma, beta):
    # var = E[x^2] - mean^2 : the two reductions are independent (no serialized
    # reduce -> sub -> reduce chain); numerically fine in f32 at these scales.
    mu = jnp.mean(x, axis=-1, keepdims=True)
    ex2 = jnp.mean(x * x, axis=-1, keepdims=True)
    var = ex2 - mu * mu
    return (x - mu) * jax.lax.rsqrt(var + LN_EPS) * gamma + beta


def _gelu_exact(x):
    # nn.GELU() default is the exact erf form
    return 0.5 * x * (1.0 + jax.lax.erf(x * (1.0 / math.sqrt(2.0))))


def self_attention_kernel(x_ref,                      # (BS, QUERY_DIM)
                          pw_ref,                     # (QUERY_DIM, E)      proj weight
                          qkvw_ref, qkvb_ref,         # (E, 3E), (1, 3E)    packed in_proj (q scaled)
                          ow_ref,                     # (E, E)              out_proj weight
                          vec_ref,                    # (7, E)  [bp, bo, g1, be1, g2, be2, b2]
                          mask_ref,                   # (R, R)  additive block-diag mask (0 / -1e30)
                          w1_ref, b1_ref, w2_ref,     # FFN
                          o_ref):                     # (BS, E)
    f32 = jnp.float32
    E, D, H = HIDDEN_DIM, HEAD_DIM, NUM_HEADS

    bp, bo = vec_ref[0:1, :], vec_ref[1:2, :]
    g1, be1 = vec_ref[2:3, :], vec_ref[3:4, :]
    g2, be2 = vec_ref[4:5, :], vec_ref[5:6, :]
    b2 = vec_ref[6:7, :]

    x = x_ref[...]

    # self.proj : Linear(query_dim -> hidden_dim), whole (BS, .) slab at once
    qp = jnp.dot(x, pw_ref[...], preferred_element_type=f32) + bp                 # (BS, E)

    # Packed qkv projection: one lane-dense (16,64)@(64,192) matmul.
    qkv = jnp.dot(qp, qkvw_ref[...], preferred_element_type=f32) + qkvb_ref[...]  # (BS, 3E)

    # Head-major relayout: rows ordered (head, batch, seq), lanes = head_dim.
    q_r = jnp.concatenate([qkv[:, h * D:(h + 1) * D] for h in range(H)], axis=0)                  # (R, D)
    k_r = jnp.concatenate([qkv[:, E + h * D:E + (h + 1) * D] for h in range(H)], axis=0)          # (R, D)
    v_r = jnp.concatenate([qkv[:, 2 * E + h * D:2 * E + (h + 1) * D] for h in range(H)], axis=0)  # (R, D)

    # All (head, batch) attention blocks in ONE (128,128) score matrix; the
    # precomputed additive mask kills cross-(head,batch) entries.
    s = jax.lax.dot_general(q_r, k_r, (((1,), (1,)), ((), ())),
                            preferred_element_type=f32) + mask_ref[...]           # (R, R)
    s = s - jnp.max(s, axis=-1, keepdims=True)
    p = jnp.exp(s)
    p = p / jnp.sum(p, axis=-1, keepdims=True)        # exact divide (tight match vs reference)
    o_heads = jnp.dot(p, v_r, preferred_element_type=f32)                          # (R, D)

    # Pack heads back onto lanes -> (BS, E), then ONE fused out-projection.
    o_cat = jnp.concatenate([o_heads[h * BS:(h + 1) * BS, :] for h in range(H)], axis=1)  # (BS, E)
    attn = jnp.dot(o_cat, ow_ref[...], preferred_element_type=f32) + bo

    # residual + LayerNorm1
    y = _layer_norm(attn + qp, g1, be1)

    # FFN: Linear -> GELU -> (Dropout=id) -> Linear -> (Dropout=id)
    h1 = _gelu_exact(jnp.dot(y, w1_ref[...], preferred_element_type=f32) + b1_ref[...])
    h2 = jnp.dot(h1, w2_ref[...], preferred_element_type=f32) + b2

    # residual + LayerNorm2
    o_ref[...] = _layer_norm(h2 + y, g2, be2)


# --------------------------------- wrapper -----------------------------------
@jax.jit
def self_attention_forward(query, params):
    """query: (B, S, QUERY_DIM) float32.  Returns (B, S, HIDDEN_DIM)."""
    E = HIDDEN_DIM
    scale = 1.0 / math.sqrt(HEAD_DIM)

    in_wt, in_b = params["in_wt"], params["in_b"]            # (E, 3E), (1, 3E)
    # Keep weights 2-D and lane-dense; fold the q-scale into the W_q / b_q slice.
    qkvw = jnp.concatenate([in_wt[:, :E] * scale, in_wt[:, E:]], axis=1)   # (E, 3E)
    qkvb = jnp.concatenate([in_b[:, :E] * scale, in_b[:, E:]], axis=1)     # (1, 3E)

    # Pack the small per-feature vectors into a single (7, E) buffer.
    vecs = jnp.concatenate([params["proj_b"], params["out_b"],
                            params["ln1_g"], params["ln1_b"],
                            params["ln2_g"], params["ln2_b"],
                            params["b2"]], axis=0)                          # (7, E)

    # Block-diagonal additive mask for the fused (head, batch)-batched attention
    # core: rows/cols are in (head, batch, seq) order, groups of S consecutive.
    grp = jnp.arange(R, dtype=jnp.int32) // S
    mask = jnp.where(grp[:, None] == grp[None, :], 0.0, NEG_BIG).astype(jnp.float32)  # (R, R)

    x2d = query.reshape(BS, QUERY_DIM)

    # Single no-grid invocation: total footprint (<1 MB) trivially fits VMEM on
    # v5e/v6e/v7x, so full-array blocks with no per-grid-step overhead are best.
    # TODO(synk): if the real workload has more batch/seq/layers, add a leading
    # grid axis with dimension_semantics=("parallel",...) to use v7x's 2nd core.
    out2d = pl.pallas_call(
        self_attention_kernel,
        out_shape=jax.ShapeDtypeStruct((BS, HIDDEN_DIM), jnp.float32),
    )(x2d, params["proj_wt"], qkvw, qkvb, params["out_wt"], vecs, mask,
      params["w1t"], params["b1"], params["w2t"])
    return out2d.reshape(B, S, HIDDEN_DIM)


# --------------------------- pure-JAX reference -------------------------------
def reference_forward(query, params):
    qp = query @ params["proj_wt"] + params["proj_b"][0]
    qkv = qp @ params["in_wt"] + params["in_b"][0]
    q = qkv[..., :HIDDEN_DIM] / math.sqrt(HEAD_DIM)
    k = qkv[..., HIDDEN_DIM:2 * HIDDEN_DIM]
    v = qkv[..., 2 * HIDDEN_DIM:]
    q = q.reshape(B, S, NUM_HEADS, HEAD_DIM).transpose(0, 2, 1, 3)
    k = k.reshape(B, S, NUM_HEADS, HEAD_DIM).transpose(0, 2, 1, 3)
    v = v.reshape(B, S, NUM_HEADS, HEAD_DIM).transpose(0, 2, 1, 3)
    p = jax.nn.softmax(jnp.einsum("bhqd,bhkd->bhqk", q, k), axis=-1)
    attn = jnp.einsum("bhqk,bhkd->bhqd", p, v).transpose(0, 2, 1, 3)
    attn = attn.reshape(B, S, HIDDEN_DIM) @ params["out_wt"] + params["out_b"][0]

    def ln(x, g, b):
        mu = x.mean(-1, keepdims=True)
        var = ((x - mu) ** 2).mean(-1, keepdims=True)
        return (x - mu) / jnp.sqrt(var + LN_EPS) * g[0] + b[0]

    y = ln(attn + qp, params["ln1_g"], params["ln1_b"])
    h1 = y @ params["w1t"] + params["b1"][0]
    h1 = 0.5 * h1 * (1.0 + jax.lax.erf(h1 / math.sqrt(2.0)))
    h2 = h1 @ params["w2t"] + params["b2"][0]
    return ln(h2 + y, params["ln2_g"], params["ln2_b"])


# ----------------------------------- main -------------------------------------
if __name__ == "__main__":
    key = jax.random.PRNGKey(0)
    ks = jax.random.split(key, 16)

    def w(k, shape, scale=0.05):
        return (scale * jax.random.normal(k, shape)).astype(jnp.float32)

    # Parameters (all weight matrices stored pre-transposed for x @ W_t):
    params = {
        "proj_wt": w(ks[0], (QUERY_DIM, HIDDEN_DIM)),       # Linear(query_dim, hidden_dim)
        "proj_b":  w(ks[1], (1, HIDDEN_DIM), 0.01),
        "in_wt":   w(ks[2], (HIDDEN_DIM, 3 * HIDDEN_DIM)),  # MHA in_proj (packed q,k,v)
        "in_b":    w(ks[3], (1, 3 * HIDDEN_DIM), 0.01),
        "out_wt":  w(ks[4], (HIDDEN_DIM, HIDDEN_DIM)),      # MHA out_proj
        "out_b":   w(ks[5], (1, HIDDEN_DIM), 0.01),
        "ln1_g":   jnp.ones((1, HIDDEN_DIM), jnp.float32),
        "ln1_b":   jnp.zeros((1, HIDDEN_DIM), jnp.float32),
        "w1t":     w(ks[6], (HIDDEN_DIM, FFN_DIM)),         # ffn Linear(E, 4E)
        "b1":      w(ks[7], (1, FFN_DIM), 0.01),
        "w2t":     w(ks[8], (FFN_DIM, HIDDEN_DIM)),         # ffn Linear(4E, E)
        "b2":      w(ks[9], (1, HIDDEN_DIM), 0.01),
        "ln2_g":   jnp.ones((1, HIDDEN_DIM), jnp.float32),
        "ln2_b":   jnp.zeros((1, HIDDEN_DIM), jnp.float32),
    }

    query = jax.random.normal(ks[10], (B, S, QUERY_DIM), dtype=jnp.float32)

    out = self_attention_forward(query, params)
    out = jax.block_until_ready(out)

    ref = reference_forward(query, params)
    assert out.shape == (B, S, HIDDEN_DIM)
    assert jnp.allclose(out, ref, atol=1e-4, rtol=1e-4), "mismatch vs JAX reference"

    # TODO(synk): key_padding_mask / need_weights / add_positional paths not exercised
    # (module defaults: mask=None, need_weights=False, add_positional=False).
    print("KERNEL_OK")
</pallas_src>

<mosaic_0001>
module attributes {stable_mosaic.version = 11 : i64} {
  func.func @self_attention_kernel(%arg0: memref<16x32xf32, #tpu.memory_space<vmem>>, %arg1: memref<32x64xf32, #tpu.memory_space<vmem>>, %arg2: memref<64x192xf32, #tpu.memory_space<vmem>>, %arg3: memref<1x192xf32, #tpu.memory_space<vmem>>, %arg4: memref<64x64xf32, #tpu.memory_space<vmem>>, %arg5: memref<7x64xf32, #tpu.memory_space<vmem>>, %arg6: memref<128x128xf32, #tpu.memory_space<vmem>>, %arg7: memref<64x256xf32, #tpu.memory_space<vmem>>, %arg8: memref<1x256xf32, #tpu.memory_space<vmem>>, %arg9: memref<256x64xf32, #tpu.memory_space<vmem>>, %arg10: memref<16x64xf32, #tpu.memory_space<vmem>>) attributes {dimension_semantics = [], scalar_prefetch = 0 : i64, scratch_operands = 0 : i64, tpu.core_type = #tpu.core_type<tc>} {
    %c0 = arith.constant 0 : index
    %c0_0 = arith.constant 0 : index
    %0 = vector.load %arg5[%c0, %c0_0] : memref<7x64xf32, #tpu.memory_space<vmem>>, vector<1x64xf32>
    %c1 = arith.constant 1 : index
    %c0_1 = arith.constant 0 : index
    %1 = vector.load %arg5[%c1, %c0_1] : memref<7x64xf32, #tpu.memory_space<vmem>>, vector<1x64xf32>
    %c2 = arith.constant 2 : index
    %c0_2 = arith.constant 0 : index
    %2 = vector.load %arg5[%c2, %c0_2] : memref<7x64xf32, #tpu.memory_space<vmem>>, vector<1x64xf32>
    %c3 = arith.constant 3 : index
    %c0_3 = arith.constant 0 : index
    %3 = vector.load %arg5[%c3, %c0_3] : memref<7x64xf32, #tpu.memory_space<vmem>>, vector<1x64xf32>
    %c4 = arith.constant 4 : index
    %c0_4 = arith.constant 0 : index
    %4 = vector.load %arg5[%c4, %c0_4] : memref<7x64xf32, #tpu.memory_space<vmem>>, vector<1x64xf32>
    %c5 = arith.constant 5 : index
    %c0_5 = arith.constant 0 : index
    %5 = vector.load %arg5[%c5, %c0_5] : memref<7x64xf32, #tpu.memory_space<vmem>>, vector<1x64xf32>
    %c6 = arith.constant 6 : index
    %c0_6 = arith.constant 0 : index
    %6 = vector.load %arg5[%c6, %c0_6] : memref<7x64xf32, #tpu.memory_space<vmem>>, vector<1x64xf32>
    %c0_7 = arith.constant 0 : index
    %c0_8 = arith.constant 0 : index
    %7 = vector.load %arg0[%c0_7, %c0_8] : memref<16x32xf32, #tpu.memory_space<vmem>>, vector<16x32xf32>
    %c0_9 = arith.constant 0 : index
    %c0_10 = arith.constant 0 : index
    %8 = vector.load %arg1[%c0_9, %c0_10] : memref<32x64xf32, #tpu.memory_space<vmem>>, vector<32x64xf32>
    %cst = arith.constant dense<0.000000e+00> : vector<16x64xf32>
    %9 = tpu.matmul %7, %8, %cst {dimension_numbers = #tpu.dot_dimension_numbers<[1], [0], [0], [1], [0, 0, 1, 1], [], []>} : vector<16x32xf32>, vector<32x64xf32>, vector<16x64xf32> -> vector<16x64xf32>
    %10 = vector.broadcast %0 : vector<1x64xf32> to vector<16x64xf32>
    %11 = arith.addf %9, %10 : vector<16x64xf32>
    %c0_11 = arith.constant 0 : index
    %c0_12 = arith.constant 0 : index
    %12 = vector.load %arg2[%c0_11, %c0_12] : memref<64x192xf32, #tpu.memory_space<vmem>>, vector<64x192xf32>
    %cst_13 = arith.constant dense<0.000000e+00> : vector<16x192xf32>
    %13 = tpu.matmul %11, %12, %cst_13 {dimension_numbers = #tpu.dot_dimension_numbers<[1], [0], [0], [1], [0, 0, 1, 1], [], []>} : vector<16x64xf32>, vector<64x192xf32>, vector<16x192xf32> -> vector<16x192xf32>
    %c0_14 = arith.constant 0 : index
    %c0_15 = arith.constant 0 : index
    %14 = vector.load %arg3[%c0_14, %c0_15] : memref<1x192xf32, #tpu.memory_space<vmem>>, vector<1x192xf32>
    %15 = vector.broadcast %14 : vector<1x192xf32> to vector<16x192xf32>
    %16 = arith.addf %13, %15 : vector<16x192xf32>
    %17 = vector.extract_strided_slice %16 {offsets = [0, 0], sizes = [16, 8], strides = [1, 1]} : vector<16x192xf32> to vector<16x8xf32>
    %18 = vector.extract_strided_slice %16 {offsets = [0, 8], sizes = [16, 8], strides = [1, 1]} : vector<16x192xf32> to vector<16x8xf32>
    %19 = vector.extract_strided_slice %16 {offsets = [0, 16], sizes = [16, 8], strides = [1, 1]} : vector<16x192xf32> to vector<16x8xf32>
    %20 = vector.extract_strided_slice %16 {offsets = [0, 24], sizes = [16, 8], strides = [1, 1]} : vector<16x192xf32> to vector<16x8xf32>
    %21 = vector.extract_strided_slice %16 {offsets = [0, 32], sizes = [16, 8], strides = [1, 1]} : vector<16x192xf32> to vector<16x8xf32>
    %22 = vector.extract_strided_slice %16 {offsets = [0, 40], sizes = [16, 8], strides = [1, 1]} : vector<16x192xf32> to vector<16x8xf32>
    %23 = vector.extract_strided_slice %16 {offsets = [0, 48], sizes = [16, 8], strides = [1, 1]} : vector<16x192xf32> to vector<16x8xf32>
    %24 = vector.extract_strided_slice %16 {offsets = [0, 56], sizes = [16, 8], strides = [1, 1]} : vector<16x192xf32> to vector<16x8xf32>
    %25 = tpu.concatenate %17, %18, %19, %20, %21, %22, %23, %24 in 0 : vector<16x8xf32>, vector<16x8xf32>, vector<16x8xf32>, vector<16x8xf32>, vector<16x8xf32>, vector<16x8xf32>, vector<16x8xf32>, vector<16x8xf32> -> vector<128x8xf32>
    %26 = vector.extract_strided_slice %16 {offsets = [0, 64], sizes = [16, 8], strides = [1, 1]} : vector<16x192xf32> to vector<16x8xf32>
    %27 = vector.extract_strided_slice %16 {offsets = [0, 72], sizes = [16, 8], strides = [1, 1]} : vector<16x192xf32> to vector<16x8xf32>
    %28 = vector.extract_strided_slice %16 {offsets = [0, 80], sizes = [16, 8], strides = [1, 1]} : vector<16x192xf32> to vector<16x8xf32>
    %29 = vector.extract_strided_slice %16 {offsets = [0, 88], sizes = [16, 8], strides = [1, 1]} : vector<16x192xf32> to vector<16x8xf32>
    %30 = vector.extract_strided_slice %16 {offsets = [0, 96], sizes = [16, 8], strides = [1, 1]} : vector<16x192xf32> to vector<16x8xf32>
    %31 = vector.extract_strided_slice %16 {offsets = [0, 104], sizes = [16, 8], strides = [1, 1]} : vector<16x192xf32> to vector<16x8xf32>
    %32 = vector.extract_strided_slice %16 {offsets = [0, 112], sizes = [16, 8], strides = [1, 1]} : vector<16x192xf32> to vector<16x8xf32>
    %33 = vector.extract_strided_slice %16 {offsets = [0, 120], sizes = [16, 8], strides = [1, 1]} : vector<16x192xf32> to vector<16x8xf32>
    %34 = tpu.concatenate %26, %27, %28, %29, %30, %31, %32, %33 in 0 : vector<16x8xf32>, vector<16x8xf32>, vector<16x8xf32>, vector<16x8xf32>, vector<16x8xf32>, vector<16x8xf32>, vector<16x8xf32>, vector<16x8xf32> -> vector<128x8xf32>
    %35 = vector.extract_strided_slice %16 {offsets = [0, 128], sizes = [16, 8], strides = [1, 1]} : vector<16x192xf32> to vector<16x8xf32>
    %36 = vector.extract_strided_slice %16 {offsets = [0, 136], sizes = [16, 8], strides = [1, 1]} : vector<16x192xf32> to vector<16x8xf32>
    %37 = vector.extract_strided_slice %16 {offsets = [0, 144], sizes = [16, 8], strides = [1, 1]} : vector<16x192xf32> to vector<16x8xf32>
    %38 = vector.extract_strided_slice %16 {offsets = [0, 152], sizes = [16, 8], strides = [1, 1]} : vector<16x192xf32> to vector<16x8xf32>
    %39 = vector.extract_strided_slice %16 {offsets = [0, 160], sizes = [16, 8], strides = [1, 1]} : vector<16x192xf32> to vector<16x8xf32>
    %40 = vector.extract_strided_slice %16 {offsets = [0, 168], sizes = [16, 8], strides = [1, 1]} : vector<16x192xf32> to vector<16x8xf32>
    %41 = vector.extract_strided_slice %16 {offsets = [0, 176], sizes = [16, 8], strides = [1, 1]} : vector<16x192xf32> to vector<16x8xf32>
    %42 = vector.extract_strided_slice %16 {offsets = [0, 184], sizes = [16, 8], strides = [1, 1]} : vector<16x192xf32> to vector<16x8xf32>
    %43 = tpu.concatenate %35, %36, %37, %38, %39, %40, %41, %42 in 0 : vector<16x8xf32>, vector<16x8xf32>, vector<16x8xf32>, vector<16x8xf32>, vector<16x8xf32>, vector<16x8xf32>, vector<16x8xf32>, vector<16x8xf32> -> vector<128x8xf32>
    %cst_16 = arith.constant dense<0.000000e+00> : vector<128x128xf32>
    %44 = tpu.matmul %25, %34, %cst_16 {dimension_numbers = #tpu.dot_dimension_numbers<[1], [1], [0], [0], [0, 0, 1, 0], [], []>} : vector<128x8xf32>, vector<128x8xf32>, vector<128x128xf32> -> vector<128x128xf32>
    %c0_17 = arith.constant 0 : index
    %c0_18 = arith.constant 0 : index
    %45 = vector.load %arg6[%c0_17, %c0_18] : memref<128x128xf32, #tpu.memory_space<vmem>>, vector<128x128xf32>
    %46 = arith.addf %44, %45 : vector<128x128xf32>
    %cst_19 = arith.constant dense<0xFF800000> : vector<128xf32>
    %47 = vector.multi_reduction <maximumf>, %46, %cst_19 [1] : vector<128x128xf32> to vector<128xf32>
    %48 = vector.shape_cast %47 : vector<128xf32> to vector<128x1xf32>
    %49 = vector.broadcast %48 : vector<128x1xf32> to vector<128x128xf32>
    %50 = arith.subf %46, %49 : vector<128x128xf32>
    %51 = math.exp %50 : vector<128x128xf32>
    %cst_20 = arith.constant dense<0.000000e+00> : vector<128xf32>
    %52 = vector.multi_reduction <add>, %51, %cst_20 [1] : vector<128x128xf32> to vector<128xf32>
    %53 = vector.shape_cast %52 : vector<128xf32> to vector<128x1xf32>
    %54 = vector.broadcast %53 : vector<128x1xf32> to vector<128x128xf32>
    %55 = arith.divf %51, %54 : vector<128x128xf32>
    %cst_21 = arith.constant dense<0.000000e+00> : vector<128x8xf32>
    %56 = tpu.matmul %55, %43, %cst_21 {dimension_numbers = #tpu.dot_dimension_numbers<[1], [0], [0], [1], [0, 0, 1, 1], [], []>} : vector<128x128xf32>, vector<128x8xf32>, vector<128x8xf32> -> vector<128x8xf32>
    %57 = vector.extract_strided_slice %56 {offsets = [0, 0], sizes = [16, 8], strides = [1, 1]} : vector<128x8xf32> to vector<16x8xf32>
    %58 = vector.extract_strided_slice %56 {offsets = [16, 0], sizes = [16, 8], strides = [1, 1]} : vector<128x8xf32> to vector<16x8xf32>
    %59 = vector.extract_strided_slice %56 {offsets = [32, 0], sizes = [16, 8], strides = [1, 1]} : vector<128x8xf32> to vector<16x8xf32>
    %60 = vector.extract_strided_slice %56 {offsets = [48, 0], sizes = [16, 8], strides = [1, 1]} : vector<128x8xf32> to vector<16x8xf32>
    %61 = vector.extract_strided_slice %56 {offsets = [64, 0], sizes = [16, 8], strides = [1, 1]} : vector<128x8xf32> to vector<16x8xf32>
    %62 = vector.extract_strided_slice %56 {offsets = [80, 0], sizes = [16, 8], strides = [1, 1]} : vector<128x8xf32> to vector<16x8xf32>
    %63 = vector.extract_strided_slice %56 {offsets = [96, 0], sizes = [16, 8], strides = [1, 1]} : vector<128x8xf32> to vector<16x8xf32>
    %64 = vector.extract_strided_slice %56 {offsets = [112, 0], sizes = [16, 8], strides = [1, 1]} : vector<128x8xf32> to vector<16x8xf32>
    %65 = tpu.concatenate %57, %58, %59, %60, %61, %62, %63, %64 in 1 : vector<16x8xf32>, vector<16x8xf32>, vector<16x8xf32>, vector<16x8xf32>, vector<16x8xf32>, vector<16x8xf32>, vector<16x8xf32>, vector<16x8xf32> -> vector<16x64xf32>
    %c0_22 = arith.constant 0 : index
    %c0_23 = arith.constant 0 : index
    %66 = vector.load %arg4[%c0_22, %c0_23] : memref<64x64xf32, #tpu.memory_space<vmem>>, vector<64x64xf32>
    %cst_24 = arith.constant dense<0.000000e+00> : vector<16x64xf32>
    %67 = tpu.matmul %65, %66, %cst_24 {dimension_numbers = #tpu.dot_dimension_numbers<[1], [0], [0], [1], [0, 0, 1, 1], [], []>} : vector<16x64xf32>, vector<64x64xf32>, vector<16x64xf32> -> vector<16x64xf32>
    %68 = vector.broadcast %1 : vector<1x64xf32> to vector<16x64xf32>
    %69 = arith.addf %67, %68 : vector<16x64xf32>
    %70 = arith.addf %69, %11 : vector<16x64xf32>
    %cst_25 = arith.constant dense<0.000000e+00> : vector<16xf32>
    %71 = vector.multi_reduction <add>, %70, %cst_25 [1] : vector<16x64xf32> to vector<16xf32>
    %72 = vector.shape_cast %71 : vector<16xf32> to vector<16x1xf32>
    %cst_26 = arith.constant 6.400000e+01 : f32
    %73 = vector.broadcast %cst_26 : f32 to vector<16x1xf32>
    %74 = arith.divf %72, %73 : vector<16x1xf32>
    %75 = arith.mulf %70, %70 : vector<16x64xf32>
    %cst_27 = arith.constant dense<0.000000e+00> : vector<16xf32>
    %76 = vector.multi_reduction <add>, %75, %cst_27 [1] : vector<16x64xf32> to vector<16xf32>
    %77 = vector.shape_cast %76 : vector<16xf32> to vector<16x1xf32>
    %cst_28 = arith.constant 6.400000e+01 : f32
    %78 = vector.broadcast %cst_28 : f32 to vector<16x1xf32>
    %79 = arith.divf %77, %78 : vector<16x1xf32>
    %80 = arith.mulf %74, %74 : vector<16x1xf32>
    %81 = arith.subf %79, %80 : vector<16x1xf32>
    %82 = vector.broadcast %74 : vector<16x1xf32> to vector<16x64xf32>
    %83 = arith.subf %70, %82 : vector<16x64xf32>
    %cst_29 = arith.constant 9.99999974E-6 : f32
    %84 = vector.broadcast %cst_29 : f32 to vector<16x1xf32>
    %85 = arith.addf %81, %84 : vector<16x1xf32>
    %86 = math.rsqrt %85 : vector<16x1xf32>
    %87 = vector.broadcast %86 : vector<16x1xf32> to vector<16x64xf32>
    %88 = arith.mulf %83, %87 : vector<16x64xf32>
    %89 = vector.broadcast %2 : vector<1x64xf32> to vector<16x64xf32>
    %90 = arith.mulf %88, %89 : vector<16x64xf32>
    %91 = vector.broadcast %3 : vector<1x64xf32> to vector<16x64xf32>
    %92 = arith.addf %90, %91 : vector<16x64xf32>
    %c0_30 = arith.constant 0 : index
    %c0_31 = arith.constant 0 : index
    %93 = vector.load %arg7[%c0_30, %c0_31] : memref<64x256xf32, #tpu.memory_space<vmem>>, vector<64x256xf32>
    %cst_32 = arith.constant dense<0.000000e+00> : vector<16x256xf32>
    %94 = tpu.matmul %92, %93, %cst_32 {dimension_numbers = #tpu.dot_dimension_numbers<[1], [0], [0], [1], [0, 0, 1, 1], [], []>} : vector<16x64xf32>, vector<64x256xf32>, vector<16x256xf32> -> vector<16x256xf32>
    %c0_33 = arith.constant 0 : index
    %c0_34 = arith.constant 0 : index
    %95 = vector.load %arg8[%c0_33, %c0_34] : memref<1x256xf32, #tpu.memory_space<vmem>>, vector<1x256xf32>
    %96 = vector.broadcast %95 : vector<1x256xf32> to vector<16x256xf32>
    %97 = arith.addf %94, %96 : vector<16x256xf32>
    %cst_35 = arith.constant 5.000000e-01 : f32
    %98 = vector.broadcast %cst_35 : f32 to vector<16x256xf32>
    %99 = arith.mulf %98, %97 : vector<16x256xf32>
    %cst_36 = arith.constant 0.707106769 : f32
    %100 = vector.broadcast %cst_36 : f32 to vector<16x256xf32>
    %101 = arith.mulf %97, %100 : vector<16x256xf32>
    %102 = math.erf %101 : vector<16x256xf32>
    %cst_37 = arith.constant 1.000000e+00 : f32
    %103 = vector.broadcast %cst_37 : f32 to vector<16x256xf32>
    %104 = arith.addf %103, %102 : vector<16x256xf32>
    %105 = arith.mulf %99, %104 : vector<16x256xf32>
    %c0_38 = arith.constant 0 : index
    %c0_39 = arith.constant 0 : index
    %106 = vector.load %arg9[%c0_38, %c0_39] : memref<256x64xf32, #tpu.memory_space<vmem>>, vector<256x64xf32>
    %cst_40 = arith.constant dense<0.000000e+00> : vector<16x64xf32>
    %107 = tpu.matmul %105, %106, %cst_40 {dimension_numbers = #tpu.dot_dimension_numbers<[1], [0], [0], [1], [0, 0, 1, 1], [], []>} : vector<16x256xf32>, vector<256x64xf32>, vector<16x64xf32> -> vector<16x64xf32>
    %108 = vector.broadcast %6 : vector<1x64xf32> to vector<16x64xf32>
    %109 = arith.addf %107, %108 : vector<16x64xf32>
    %110 = arith.addf %109, %92 : vector<16x64xf32>
    %cst_41 = arith.constant dense<0.000000e+00> : vector<16xf32>
    %111 = vector.multi_reduction <add>, %110, %cst_41 [1] : vector<16x64xf32> to vector<16xf32>
    %112 = vector.shape_cast %111 : vector<16xf32> to vector<16x1xf32>
    %cst_42 = arith.constant 6.400000e+01 : f32
    %113 = vector.broadcast %cst_42 : f32 to vector<16x1xf32>
    %114 = arith.divf %112, %113 : vector<16x1xf32>
    %115 = arith.mulf %110, %110 : vector<16x64xf32>
    %cst_43 = arith.constant dense<0.000000e+00> : vector<16xf32>
    %116 = vector.multi_reduction <add>, %115, %cst_43 [1] : vector<16x64xf32> to vector<16xf32>
    %117 = vector.shape_cast %116 : vector<16xf32> to vector<16x1xf32>
    %cst_44 = arith.constant 6.400000e+01 : f32
    %118 = vector.broadcast %cst_44 : f32 to vector<16x1xf32>
    %119 = arith.divf %117, %118 : vector<16x1xf32>
    %120 = arith.mulf %114, %114 : vector<16x1xf32>
    %121 = arith.subf %119, %120 : vector<16x1xf32>
    %122 = vector.broadcast %114 : vector<16x1xf32> to vector<16x64xf32>
    %123 = arith.subf %110, %122 : vector<16x64xf32>
    %cst_45 = arith.constant 9.99999974E-6 : f32
    %124 = vector.broadcast %cst_45 : f32 to vector<16x1xf32>
    %125 = arith.addf %121, %124 : vector<16x1xf32>
    %126 = math.rsqrt %125 : vector<16x1xf32>
    %127 = vector.broadcast %126 : vector<16x1xf32> to vector<16x64xf32>
    %128 = arith.mulf %123, %127 : vector<16x64xf32>
    %129 = vector.broadcast %4 : vector<1x64xf32> to vector<16x64xf32>
    %130 = arith.mulf %128, %129 : vector<16x64xf32>
    %131 = vector.broadcast %5 : vector<1x64xf32> to vector<16x64xf32>
    %132 = arith.addf %130, %131 : vector<16x64xf32>
    %c0_46 = arith.constant 0 : index
    %c0_47 = arith.constant 0 : index
    %133 = vector.load %arg10[%c0_46, %c0_47] : memref<16x64xf32, #tpu.memory_space<vmem>>, vector<16x64xf32>
    tpu.vector_store %arg10[%c0_46, %c0_47], %132 {strides = array<i32>} : memref<16x64xf32, #tpu.memory_space<vmem>>, vector<16x64xf32>,
    return
  }
}

</mosaic_0001>

<bundles_post_ra>
// kernel: self_attention_forward.1
= control target key start
LH: loop header
LB: loop body
LE: loop exit
PB: predicated region body
PF: predicated region fallthrough
CT: control target
= control target key end

     0   :  { %vm53_vm0 = vcmask 261120   ;;  %s2813_s0 = inlined_call_operand.vmem [shape: f32[16,32], index: 0, kind: input, shape index: {}]   ;;  %s2814_s1 = inlined_call_operand.vmem [shape: f32[32,64], index: 1, kind: input, shape index: {}]   ;;  %s2815_s2 = inlined_call_operand.vmem [shape: f32[64,192], index: 2, kind: input, shape index: {}]   ;;  %s2816_s3 = inlined_call_operand.vmem [shape: f32[1,192], index: 3, kind: input, shape index: {}]   ;;  %s2817_s4 = inlined_call_operand.vmem [shape: f32[64,64], index: 4, kind: input, shape index: {}]   ;;  %s2818_s5 = inlined_call_operand.vmem [shape: f32[7,64], index: 5, kind: input, shape index: {}]   ;;  %s2819_s6 = inlined_call_operand.vmem [shape: f32[128,128], index: 6, kind: input, shape index: {}]   ;;  %s2820_s7 = inlined_call_operand.vmem [shape: f32[64,256], index: 7, kind: input, shape index: {}]   ;;  %s2821_s8 = inlined_call_operand.vmem [shape: f32[1,256], index: 8, kind: input, shape index: {}]   ;;  %s2822_s9 = inlined_call_operand.vmem [shape: f32[256,64], index: 9, kind: input, shape index: {}]   ;;  %s2823_s10 = inlined_call_operand.hbm [shape: f32[16,64], index: 10, kind: output, shape index: {}]  }
   0x1   :  { %v45_v0 = vld [vmem:[%s2814_s1] sm:$0xff]  ;;  %v46_v1 = vld [vmem:[%s2814_s1 + $0x8] sm:$0xff]  ;;  %v47_v2 = vld [vmem:[%s2814_s1 + $0x10] sm:$0xff] }
   0x2   :  { %v1692_v3 = vpack.c.bf16 %v46_v1, %v45_v0  ;;  %v48_v4 = vld [vmem:[%s2814_s1 + $0x18] sm:$0xff]  ;;  %v43_v5 = vld [vmem:[%s2813_s0] sm:$0xff]  ;;  %v136_v7 = vld [vmem:[%s2815_s2 + $0x8] sm:$0xff] }
   0x3   :  { %v1696_v6 = vpack.c.bf16 %v48_v4, %v47_v2  ;;  %1558 = vmatprep.mubr.msk.f32.mxu0 %vm53_vm0, %v43_v5  ;;  %v138_v8 = vld [vmem:[%s2815_s2 + $0x18] sm:$0xff]  ;;  %v135_v9 = vld [vmem:[%s2815_s2] sm:$0xff]  ;;  %v137_v11 = vld [vmem:[%s2815_s2 + $0x10] sm:$0xff] }
   0x4   :  { %1693 = vmatprep.subr.bf16.mxu0 %v1692_v3  ;;  %v1700_v10 = vpack.c.bf16 %v138_v8, %v136_v7  ;;  %v140_v12 = vld [vmem:[%s2815_s2 + $0x28] sm:$0xff]  ;;  %v142_v13 = vld [vmem:[%s2815_s2 + $0x38] sm:$0xff]  ;;  %v1702_v14 = vpack.c.bf16 %v137_v11, %v135_v9  ;;  %v139_v16 = vld [vmem:[%s2815_s2 + $0x20] sm:$0xff] }
   0x5   :  { %1695 = vmatpush3.bf16.msra.mxu0 %v1692_v3  ;;  %v1704_v15 = vpack.c.bf16 %v142_v13, %v140_v12  ;;  %v141_v17 = vld [vmem:[%s2815_s2 + $0x30] sm:$0xff]  ;;  %v144_v18 = vld [vmem:[%s2815_s2 + $0x48] sm:$0xff]  ;;  %v146_v19 = vld [vmem:[%s2815_s2 + $0x58] sm:$0xff] }
   0x6   :  { %1697 = vmatprep.subr.bf16.mxu0 %v1696_v6  ;;  %1701 = vmatprep.subr.bf16.mxu1 %v1700_v10  ;;  %v1706_v20 = vpack.c.bf16 %v141_v17, %v139_v16 }
   0x7   :  { %1703 = vmatpush1.bf16.msra.mxu1 %v1702_v14 }
   0x8   :  { %15 = vsyncpa [#allocation3], 0  ;;  %1705 = vmatprep.subr.bf16.mxu1 %v1704_v15  ;;  %v1708_v21 = vpack.c.bf16 %v146_v19, %v144_v18  ;;  %v143_v22 = vld [vmem:[%s2815_s2 + $0x40] sm:$0xff]  ;;  %v145_v23 = vld [vmem:[%s2815_s2 + $0x50] sm:$0xff]  ;;  %v2057_v32 = vmov 0.0   ;;  %vm163_vm1 = vcmask 523264   ;;  %v153_v38 = vlaneseq }
   0x9   :  { %1699 = vmatpush3.bf16.msra.mxu0 %v1696_v6  ;;  %v44_v24 = vld [vmem:[%s2813_s0 + $0x8] sm:$0xff]  ;;  %v1710_v25 = vpack.c.bf16 %v145_v23, %v143_v22  ;;  %v150_v27 = vld [vmem:[%s2815_s2 + $0x78] sm:$0xff]  ;;  %v147_v29 = vld [vmem:[%s2815_s2 + $0x60] sm:$0xff]  ;;  %234 = vmatprep.mubr.f32.mxu1 %v2057_v32  ;;  %vm369_vm2 = vcmask 64512   ;;  %s2058_s17 = smov 112   ;;  %s2059_s18 = smov 120  }
   0xa   :  { %v148_v26 = vld [vmem:[%s2815_s2 + $0x68] sm:$0xff]  ;;  %v149_v30 = vld [vmem:[%s2815_s2 + $0x70] sm:$0xff]  ;;  %v1385_v33 = vld [vmem:[%s2818_s5] ss:$0 sm:$0xff]  ;;  %v2211_v39 = vshrl.u32 %v153_v38, 7  ;;  %s2061_s19 = smov 96  }
   0xb   :  { %1707 = vmatpush1.bf16.msra.mxu1 %v1706_v20  ;;  %v1712_v28 = vpack.c.bf16 %v150_v27, %v148_v26  ;;  %v1714_v31 = vpack.c.bf16 %v149_v30, %v147_v29  ;;  %v151_v41 = vld [vmem:[%s2816_s3] sm:$0x3]  ;;  %s2060_s3 = smov 104   ;;  %s2062_s20 = smov 88   ;;  %vm2303_vm3 = vmpackc.low %vm369_vm2, %vm369_vm2  ;;  %vm926_vm4 = vcmask 130048   ;;  %vm929_vm5 = vcmask 195584  }
   0xc   :  { %1559 = vmatmul.mubr.msk.f32.vlgmr.msra.gmra.mrb[0].mxu0 %vm53_vm0, %v44_v24  ;;  %1709 = vmatprep.subr.bf16.mxu1 %v1708_v21  ;;  %v155_v40 = vsub.s32 0, %v2211_v39  ;;  %v159_v43 = vsub.s32 1, %v2211_v39  ;;  %s2063_s21 = smov 80   ;;  %s2064_s22 = smov 72   ;;  %vm934_vm6 = vcmask 326656   ;;  %vm937_vm7 = vcmask 392192  }
   0xd   :  { %s2065_s23 = smov 64   ;;  %s2067_s24 = smov 16   ;;  %vm940_vm8 = vcmask 457728  }
   0xe   :  { %v156_v42 = vrot.slane %v151_v41, %v155_v40  ;;  %v160_v47 = vrot.slane %v151_v41, %v159_v43  ;;  %s2068_s1 = smov 24   ;;  %s2069_s29 = smov 32  }
   0xf   :  { %1711 = vmatpush1.bf16.msra.mxu1 %v1710_v25  ;;  %s2070_s30 = smov 40   ;;  %s2072_s11 = smov 56  }
  0x10   :  { %1713 = vmatprep.subr.bf16.mxu1 %v1712_v28 }
  0x13   :  { %1715 = vmatpush1.bf16.msra.mxu1 %v1714_v31 }
  0xdf   :  { %v1560_v34 = vpop.f32.mrb[0].mxu0 }
  0xe0   :  { %v126_v35 = vpop.f32.mrb[1].mxu0  ;;  %v2207_v37 = vadd.f32 %v1560_v34, %v1385_v33 }
  0xe1   :  { %v2202_v36 = vadd.f32 %v1385_v33, %v126_v35 }
  0xe3   :  { %1388 = vmatmul.mubr.msk.f32.vlgmr.msra.gmra.mrb[0].mxu1 %vm163_vm1, %v2202_v36 }
  0xe4   :  { %240 = vmatprep.mubr.f32.mxu1 %v2057_v32 }
  0xe7   :  { %1389 = vmatmul.mubr.msk.f32.gmra.mrb[2].mxu1 %vm163_vm1, %v2207_v37 }
 0x1b6   :  { %v236_v44 = vpop.f32.mrb[0].mxu1 }
 0x1b7   :  { %v237_v45 = vadd.f32 %v236_v44, %v156_v42  ;;  %v238_v46 = vpop.f32.mrb[1].mxu1 }
 0x1b8   :  { %v239_v51 = vadd.f32 %v238_v46, %v160_v47 }
 0x1b9   :  { %253 = vrot.lane.b32.xlu1 %v237_v45, %s2058_s17  ;;  %249 = vrot.lane.b32.xlu0 %v237_v45, %s2059_s18 }
 0x1ba   :  { %1593 = vmatprep.mubr.msk.f32.mxu0 %vm369_vm2, %v237_v45  ;;  %v242_v48 = vpop.f32.mrb[2].mxu1 }
 0x1bb   :  { %v2225_v49 = vadd.f32 %v242_v48, %v156_v42  ;;  %v244_v50 = vpop.f32.mrb[3].mxu1 }
 0x1bc   :  { %v245_v52 = vadd.f32 %v244_v50, %v160_v47 }
 0x1bd   :  { %255 = vrot.lane.b32.xlu1 %v2225_v49, %s2058_s17  ;;  %251 = vrot.lane.b32.xlu0 %v2225_v49, %s2059_s18  ;;  %v1878_v55 = vpack.i.bf16 %v2225_v49, %v237_v45 }
 0x1be   :  { %v1764_v53 = vpack.c.bf16 %v245_v52, %v239_v51  ;;  %v2231_v54 = vpack.i.bf16 %v245_v52, %v239_v51 }
 0x1c0   :  { %1765 = vmatprep.subr.bf16.mxu1 %v1764_v53 }
 0x1c1   :  { %1767 = vmatpush3.bf16.msra.mxu1 %v1764_v53  ;;  %259 = vrot.lane.b32.xlu1 %v2225_v49, %s2060_s3 }
 0x1c2   :  { %257 = vrot.lane.b32.xlu0 %v237_v45, %s2060_s3 }
 0x1c5   :  { %263 = vrot.lane.b32.xlu1 %v2225_v49, %s2061_s19 }
 0x1c6   :  { %261 = vrot.lane.b32.xlu0 %v237_v45, %s2061_s19 }
 0x1c9   :  { %267 = vrot.lane.b32.xlu1 %v2225_v49, %s2062_s20 }
 0x1ca   :  { %265 = vrot.lane.b32.xlu0 %v237_v45, %s2062_s20 }
 0x1cd   :  { %271 = vrot.lane.b32.xlu1 %v2225_v49, %s2063_s21 }
 0x1ce   :  { %269 = vrot.lane.b32.xlu0 %v237_v45, %s2063_s21 }
 0x1d1   :  { %275 = vrot.lane.b32.xlu1 %v2225_v49, %s2064_s22 }
 0x1d2   :  { %273 = vrot.lane.b32.xlu0 %v237_v45, %s2064_s22 }
 0x1d6   :  { %1879 = vrot.lane.b32.xlu0 %v1878_v55, %s2065_s23 }
 0x22b   :  { %v2250_v56 = vpop.permute.xlu1 %253  ;;  %v2252_v57 = vpop.permute.xlu0 %249 }
 0x22f   :  { %v2254_v58 = vpop.permute.xlu1 %255  ;;  %v2256_v59 = vpop.permute.xlu0 %251 }
 0x230   :  { %v1888_v60 = vpack.i.bf16 %v2254_v58, %v2250_v56  ;;  %v1883_v61 = vpack.i.bf16 %v2256_v59, %v2252_v57 }
 0x232   :  { %1889 = vrot.lane.b32.xlu0 %v1888_v60, %s2065_s23  ;;  %1884 = vrot.lane.b32.xlu1 %v1883_v61, %s2065_s23 }
 0x233   :  { %v2264_v62 = vpop.permute.xlu1 %259 }
 0x234   :  { %v2266_v63 = vpop.permute.xlu0 %257 }
 0x235   :  { %v1893_v0 = vpack.i.bf16 %v2264_v62, %v2266_v63 }
 0x237   :  { %1894 = vrot.lane.b32.xlu1 %v1893_v0, %s2065_s23  ;;  %v2271_v1 = vpop.permute.xlu1 %263 }
 0x238   :  { %v2273_v2 = vpop.permute.xlu0 %261 }
 0x239   :  { %v1898_v3 = vpack.i.bf16 %v2271_v1, %v2273_v2 }
 0x23b   :  { %1899 = vrot.lane.b32.xlu0 %v1898_v3, %s2065_s23  ;;  %v2278_v4 = vpop.permute.xlu1 %267 }
 0x23c   :  { %v2280_v5 = vpop.permute.xlu0 %265 }
 0x23d   :  { %v1903_v6 = vpack.i.bf16 %v2278_v4, %v2280_v5 }
 0x23f   :  { %1904 = vrot.lane.b32.xlu1 %v1903_v6, %s2065_s23  ;;  %v2285_v7 = vpop.permute.xlu1 %271 }
 0x240   :  { %v2287_v8 = vpop.permute.xlu0 %269 }
 0x241   :  { %v1908_v9 = vpack.i.bf16 %v2285_v7, %v2287_v8 }
 0x243   :  { %1909 = vrot.lane.b32.xlu0 %v1908_v9, %s2065_s23  ;;  %v2292_v10 = vpop.permute.xlu1 %275 }
 0x244   :  { %v2294_v11 = vpop.permute.xlu0 %273 }
 0x245   :  { %v1913_v12 = vpack.i.bf16 %v2292_v10, %v2294_v11 }
 0x247   :  { %1924 = vrot.lane.b32.xlu0 %v2231_v54, %s2058_s17  ;;  %1914 = vrot.lane.b32.xlu1 %v1913_v12, %s2065_s23 }
 0x248   :  { %v1880_v13 = vpop.permute.xlu0 %1879 }
 0x249   :  { %v1882_v14 = vunpack.i.h.bf16 %v1880_v13  ;;  %v1881_v15 = vunpack.i.l.bf16 %v1880_v13 }
 0x24b   :  { %v1716_v17 = vpack.c.bf16 %v1882_v14, %v1881_v15  ;;  %1919 = vrot.lane.b32.xlu1 %v2231_v54, %s2059_s18 }
 0x24d   :  { %1718 = vmatprep.subr.msk.bf16.mxu0 %vm2303_vm3, %v1716_v17 }
 0x24e   :  { %1721 = vmatpush3.bf16.xpose.msk.msra.mxu0 %vm2303_vm3, %v1716_v17  ;;  %v326_v17 = vld [vmem:[%s2819_s6 + $0x28] sm:$0xff] }
 0x24f   :  { %1929 = vrot.lane.b32.xlu1 %v2231_v54, %s2060_s3 }
 0x2a4   :  { %v1885_v18 = vpop.permute.xlu1 %1884  ;;  %v1890_v19 = vpop.permute.xlu0 %1889 }
 0x2a5   :  { %v1887_v20 = vunpack.i.h.bf16 %v1885_v18  ;;  %v1886_v21 = vunpack.i.l.bf16 %v1885_v18  ;;  %v1892_v22 = vunpack.i.h.bf16 %v1890_v19  ;;  %v1891_v23 = vunpack.i.l.bf16 %v1890_v19  ;;  %v327_v18 = vld [vmem:[%s2819_s6 + $0x30] sm:$0xff] }
 0x2a7   :  { %v1722_v24 = vpack.c.bf16 %v1887_v20, %v1886_v21  ;;  %v1728_v25 = vpack.c.bf16 %v1892_v22, %v1891_v23  ;;  %v328_v23 = vld [vmem:[%s2819_s6 + $0x38] sm:$0xff] }
 0x2a9   :  { %1724 = vmatprep.subr.msk.bf16.mxu0 %vm2303_vm3, %v1722_v24  ;;  %v1895_v26 = vpop.permute.xlu1 %1894 }
 0x2aa   :  { %1727 = vmatpush3.bf16.xpose.msk.msra.mxu0 %vm2303_vm3, %v1722_v24  ;;  %v1897_v27 = vunpack.i.h.bf16 %v1895_v26  ;;  %v1896_v28 = vunpack.i.l.bf16 %v1895_v26  ;;  %v329_v24 = vld [vmem:[%s2819_s6 + $0x40] sm:$0xff] }
 0x2ab   :  { %1730 = vmatprep.subr.msk.bf16.mxu0 %vm2303_vm3, %v1728_v25 }
 0x2ac   :  { %v1734_v29 = vpack.c.bf16 %v1897_v27, %v1896_v28 }
 0x2ad   :  { %v1900_v30 = vpop.permute.xlu0 %1899 }
 0x2ae   :  { %v1902_v31 = vunpack.i.h.bf16 %v1900_v30  ;;  %v1901_v33 = vunpack.i.l.bf16 %v1900_v30  ;;  %v331_v30 = vld [vmem:[%s2819_s6 + $0x50] sm:$0xff] }
 0x2b0   :  { %v1740_v38 = vpack.c.bf16 %v1902_v31, %v1901_v33 }
 0x2b1   :  { %v1905_v34 = vpop.permute.xlu1 %1904 }
 0x2b2   :  { %1733 = vmatpush3.bf16.xpose.msk.msra.mxu0 %vm2303_vm3, %v1728_v25  ;;  %v1907_v44 = vunpack.i.h.bf16 %v1905_v34  ;;  %v1906_v45 = vunpack.i.l.bf16 %v1905_v34 }
 0x2b3   :  { %1736 = vmatprep.subr.msk.bf16.mxu0 %vm2303_vm3, %v1734_v29 }
 0x2b4   :  { %v1746_v53 = vpack.c.bf16 %v1907_v44, %v1906_v45 }
 0x2b5   :  { %v1910_v35 = vpop.permute.xlu0 %1909 }
 0x2b6   :  { %v1912_v3 = vunpack.i.h.bf16 %v1910_v35  ;;  %v1911_v6 = vunpack.i.l.bf16 %v1910_v35 }
 0x2b8   :  { %v1752_v12 = vpack.c.bf16 %v1912_v3, %v1911_v6 }
 0x2b9   :  { %v1915_v41 = vpop.permute.xlu1 %1914  ;;  %v1925_v42 = vpop.permute.xlu0 %1924 }
 0x2ba   :  { %1739 = vmatpush3.bf16.xpose.msk.msra.mxu0 %vm2303_vm3, %v1734_v29  ;;  %v1927_v47 = vunpack.i.h.bf16 %v1925_v42  ;;  %v1926_v48 = vunpack.i.l.bf16 %v1925_v42  ;;  %v1917_v13 = vunpack.i.h.bf16 %v1915_v41  ;;  %v1916_v14 = vunpack.i.l.bf16 %v1915_v41  ;;  %v330_v29 = vld [vmem:[%s2819_s6 + $0x48] sm:$0xff]  ;;  %v333_v41 = vld [vmem:[%s2819_s6 + $0x60] sm:$0xff] }
 0x2bb   :  { %1742 = vmatprep.subr.msk.bf16.mxu0 %vm2303_vm3, %v1740_v38 }
 0x2bc   :  { %v1772_v60 = vpack.c.bf16 %v1927_v47, %v1926_v48  ;;  %v1758_v15 = vpack.c.bf16 %v1917_v13, %v1916_v14  ;;  %v334_v47 = vld [vmem:[%s2819_s6 + $0x68] sm:$0xff]  ;;  %v335_v48 = vld [vmem:[%s2819_s6 + $0x70] sm:$0xff] }
 0x2bd   :  { %v1920_v46 = vpop.permute.xlu1 %1919 }
 0x2be   :  { %v1922_v50 = vunpack.i.h.bf16 %v1920_v46  ;;  %v1921_v51 = vunpack.i.l.bf16 %v1920_v46 }
 0x2c0   :  { %v1768_v52 = vpack.c.bf16 %v1922_v50, %v1921_v51 }
 0x2c1   :  { %v1930_v55 = vpop.permute.xlu1 %1929 }
 0x2c2   :  { %v1932_v61 = vunpack.i.h.bf16 %v1930_v55  ;;  %v1931_v0 = vunpack.i.l.bf16 %v1930_v55  ;;  %1769 = vmatprep.subr.bf16.mxu1 %v1768_v52  ;;  %1745 = vmatpush3.bf16.xpose.msk.msra.mxu0 %vm2303_vm3, %v1740_v38  ;;  %v332_v38 = vld [vmem:[%s2819_s6 + $0x58] sm:$0xff] }
 0x2c3   :  { %1771 = vmatpush3.bf16.msra.mxu1 %v1768_v52  ;;  %1748 = vmatprep.subr.msk.bf16.mxu0 %vm2303_vm3, %v1746_v53  ;;  %v336_v55 = vld [vmem:[%s2819_s6 + $0x78] sm:$0xff] }
 0x2c4   :  { %1773 = vmatprep.subr.bf16.mxu1 %v1772_v60  ;;  %v1776_v9 = vpack.c.bf16 %v1932_v61, %v1931_v0 }
 0x2c7   :  { %1775 = vmatpush3.bf16.msra.mxu1 %v1772_v60 }
 0x2c8   :  { %1777 = vmatprep.subr.bf16.mxu1 %v1776_v9 }
 0x2ca   :  { %1751 = vmatpush3.bf16.xpose.msk.msra.mxu0 %vm2303_vm3, %v1746_v53 }
 0x2cb   :  { %1779 = vmatpush3.bf16.msra.mxu1 %v1776_v9  ;;  %1754 = vmatprep.subr.msk.bf16.mxu0 %vm2303_vm3, %v1752_v12 }
 0x2d2   :  { %1757 = vmatpush3.bf16.xpose.msk.msra.mxu0 %vm2303_vm3, %v1752_v12 }
 0x2d3   :  { %1760 = vmatprep.subr.msk.bf16.mxu0 %vm2303_vm3, %v1758_v15 }
 0x2da   :  { %1763 = vmatpush3.bf16.xpose.msk.msra.mxu0 %vm2303_vm3, %v1758_v15 }
 0x2e1   :  { %1594 = vmatmul.mubr.msk.f32.vlgmr.msra.gmra.mrb[2].mxu0 %vm369_vm2, %v2225_v49  ;;  %v322_v49 = vld [vmem:[%s2819_s6 + $0x8] sm:$0xff] }
 0x2e2   :  { %1596 = vmatprep.mubr.msk.f32.mxu0 %vm369_vm2, %v2252_v57 }
 0x2e5   :  { %1597 = vmatmul.mubr.msk.f32.gmra.mrb[4].mxu0 %vm369_vm2, %v2256_v59 }
 0x2e6   :  { %1599 = vmatprep.mubr.msk.f32.mxu0 %vm369_vm2, %v2250_v56  ;;  %v321_v56 = vld [vmem:[%s2819_s6] sm:$0xff] }
 0x2e9   :  { %1600 = vmatmul.mubr.msk.f32.gmra.mrb[6].mxu0 %vm369_vm2, %v2254_v58 }
 0x2ea   :  { %1602 = vmatprep.mubr.msk.f32.mxu0 %vm369_vm2, %v2266_v63  ;;  %v324_v63 = vld [vmem:[%s2819_s6 + $0x18] sm:$0xff] }
 0x2ed   :  { %1603 = vmatmul.mubr.msk.f32.gmra.mrb[8].mxu0 %vm369_vm2, %v2264_v62 }
 0x2ee   :  { %1605 = vmatprep.mubr.msk.f32.mxu0 %vm369_vm2, %v2273_v2 }
 0x2f1   :  { %1606 = vmatmul.mubr.msk.f32.gmra.mrb[10].mxu0 %vm369_vm2, %v2271_v1 }
 0x2f2   :  { %1608 = vmatprep.mubr.msk.f32.mxu0 %vm369_vm2, %v2280_v5  ;;  %v323_v5 = vld [vmem:[%s2819_s6 + $0x10] sm:$0xff] }
 0x2f5   :  { %1609 = vmatmul.mubr.msk.f32.gmra.mrb[12].mxu0 %vm369_vm2, %v2278_v4 }
 0x2f6   :  { %1611 = vmatprep.mubr.msk.f32.mxu0 %vm369_vm2, %v2287_v8 }
 0x2f9   :  { %1612 = vmatmul.mubr.msk.f32.gmra.mrb[14].mxu0 %vm369_vm2, %v2285_v7  ;;  %v325_v7 = vld [vmem:[%s2819_s6 + $0x20] sm:$0xff] }
 0x2fa   :  { %1614 = vmatprep.mubr.msk.f32.mxu0 %vm369_vm2, %v2294_v11 }
 0x2fd   :  { %1615 = vmatmul.mubr.msk.f32.gmra.mrb[16].mxu0 %vm369_vm2, %v2292_v10 }
 0x3b4   :  { %v1595_v57 = vpop.f32.mrb[2].mxu0 }
 0x3b5   :  { %v2379_v58 = vadd.f32 %v1595_v57, %v322_v49  ;;  %v500_v59 = vpop.f32.mrb[3].mxu0 }
 0x3b6   :  { %v2381_v62 = vadd.f32 %v500_v59, %v321_v56 }
 0x3b7   :  { %581 = vmax.xlane.f32.xlu1 %v2379_v58 }
 0x3b8   :  { %v1598_v1 = vpop.f32.mrb[4].mxu0  ;;  %579 = vmax.xlane.f32.xlu0 %v2381_v62 }
 0x3b9   :  { %v2388_v2 = vadd.f32 %v1598_v1, %v324_v63  ;;  %v510_v4 = vpop.f32.mrb[5].mxu0 }
 0x3ba   :  { %v2397_v11 = vadd.f32 %v510_v4, %v323_v5 }
 0x3bc   :  { %v1601_v8 = vpop.f32.mrb[6].mxu0  ;;  %585 = vmax.xlane.f32.xlu0 %v2388_v2 }
 0x3bd   :  { %v520_v10 = vpop.f32.mrb[7].mxu0  ;;  %v2409_v21 = vadd.f32 %v1601_v8, %v326_v17 }
 0x3be   :  { %v2399_v16 = vadd.f32 %v520_v10, %v325_v7 }
 0x3c0   :  { %v1604_v19 = vpop.f32.mrb[8].mxu0  ;;  %587 = vmax.xlane.f32.xlu1 %v2399_v16  ;;  %583 = vmax.xlane.f32.xlu0 %v2397_v11 }
 0x3c1   :  { %v530_v20 = vpop.f32.mrb[9].mxu0  ;;  %v2421_v27 = vadd.f32 %v1604_v19, %v328_v23 }
 0x3c2   :  { %v2411_v22 = vadd.f32 %v530_v20, %v327_v18 }
 0x3c4   :  { %v1607_v25 = vpop.f32.mrb[10].mxu0  ;;  %591 = vmax.xlane.f32.xlu1 %v2411_v22  ;;  %589 = vmax.xlane.f32.xlu0 %v2409_v21 }
 0x3c5   :  { %v540_v26 = vpop.f32.mrb[11].mxu0  ;;  %v2433_v34 = vadd.f32 %v1607_v25, %v330_v29 }
 0x3c6   :  { %v2423_v28 = vadd.f32 %v540_v26, %v329_v24 }
 0x3c8   :  { %v1610_v31 = vpop.f32.mrb[12].mxu0  ;;  %595 = vmax.xlane.f32.xlu1 %v2423_v28  ;;  %593 = vmax.xlane.f32.xlu0 %v2421_v27 }
 0x3c9   :  { %v550_v33 = vpop.f32.mrb[13].mxu0  ;;  %v2445_v45 = vadd.f32 %v1610_v31, %v332_v38 }
 0x3ca   :  { %v2435_v35 = vadd.f32 %v550_v33, %v331_v30 }
 0x3cc   :  { %v1613_v42 = vpop.f32.mrb[14].mxu0  ;;  %599 = vmax.xlane.f32.xlu1 %v2435_v35  ;;  %597 = vmax.xlane.f32.xlu0 %v2433_v34 }
 0x3cd   :  { %v560_v44 = vpop.f32.mrb[15].mxu0  ;;  %v2457_v52 = vadd.f32 %v1613_v42, %v334_v47 }
 0x3ce   :  { %v2447_v46 = vadd.f32 %v560_v44, %v333_v41 }
 0x3d0   :  { %v1616_v50 = vpop.f32.mrb[16].mxu0  ;;  %603 = vmax.xlane.f32.xlu1 %v2447_v46  ;;  %601 = vmax.xlane.f32.xlu0 %v2445_v45 }
 0x3d1   :  { %v570_v51 = vpop.f32.mrb[17].mxu0  ;;  %v2466_v60 = vadd.f32 %v1616_v50, %v336_v55 }
 0x3d2   :  { %v2459_v53 = vadd.f32 %v570_v51, %v335_v48 }
 0x3d4   :  { %607 = vmax.xlane.f32.xlu1 %v2459_v53  ;;  %605 = vmax.xlane.f32.xlu0 %v2457_v52 }
 0x3d8   :  { %609 = vmax.xlane.f32.xlu0 %v2466_v60 }
 0x3e5   :  { %1934 = vrot.lane.b32.xlu1 %v2231_v54, %s2061_s19 }
 0x3ee   :  { %1939 = vrot.lane.b32.xlu0 %v2231_v54, %s2062_s20  ;;  %s2073_s20 = smov [#allocation2]  }
 0x444   :  { %v582_v61 = vpop.xlane.xlu1 %581 }
 0x445   :  { %v612_v0 = vsub.f32 %v2379_v58, %v582_v61  ;;  %v580_v3 = vpop.xlane.xlu0 %579 }
 0x446   :  { %v611_v6 = vsub.f32 %v2381_v62, %v580_v3 }
 0x447   :  { %v629_v9 = vmul.f32 1.442695, %v612_v0 }
 0x448   :  { %v627_v12 = vmul.f32 1.442695, %v611_v6 }
 0x449   :  { %1953 = vpow2.f32 %v629_v9  ;;  %v586_v13 = vpop.xlane.xlu0 %585 }
 0x44a   :  { %v614_v14 = vsub.f32 %v2388_v2, %v586_v13  ;;  %1955 = vpow2.f32 %v627_v12 }
 0x44c   :  { %v633_v15 = vmul.f32 1.442695, %v614_v14 }
 0x44d   :  { %v588_v49 = vpop.xlane.xlu1 %587  ;;  %v584_v56 = vpop.xlane.xlu0 %583 }
 0x44e   :  { %v613_v57 = vsub.f32 %v2397_v11, %v584_v56  ;;  %1957 = vpow2.f32 %v633_v15  ;;  %v615_v42 = vsub.f32 %v2399_v16, %v588_v49 }
 0x450   :  { %v631_v59 = vmul.f32 1.442695, %v613_v57  ;;  %v635_v50 = vmul.f32 1.442695, %v615_v42 }
 0x451   :  { %v592_v63 = vpop.xlane.xlu1 %591  ;;  %v590_v1 = vpop.xlane.xlu0 %589 }
 0x452   :  { %1959 = vpow2.f32 %v631_v59  ;;  %v616_v38 = vsub.f32 %v2409_v21, %v590_v1  ;;  %v617_v51 = vsub.f32 %v2411_v22, %v592_v63 }
 0x453   :  { %v2477_v58 = vpop.eup %1953 }
 0x454   :  { %661 = vadd.xlane.f32.xlu0 %v2477_v58  ;;  %v2480_v5 = vpop.eup %1955  ;;  %v637_v44 = vmul.f32 1.442695, %v616_v38 }
 0x455   :  { %v596_v62 = vpop.xlane.xlu1 %595  ;;  %v594_v4 = vpop.xlane.xlu0 %593 }
 0x456   :  { %v618_v41 = vsub.f32 %v2421_v27, %v594_v4  ;;  %1961 = vpow2.f32 %v637_v44  ;;  %v619_v21 = vsub.f32 %v2423_v28, %v596_v62 }
 0x458   :  { %659 = vadd.xlane.f32.xlu0 %v2480_v5  ;;  %v2483_v8 = vpop.eup %1957  ;;  %v641_v47 = vmul.f32 1.442695, %v618_v41  ;;  %v643_v0 = vmul.f32 1.442695, %v619_v21 }
 0x459   :  { %v600_v2 = vpop.xlane.xlu1 %599  ;;  %v598_v7 = vpop.xlane.xlu0 %597 }
 0x45a   :  { %v620_v48 = vsub.f32 %v2433_v34, %v598_v7  ;;  %1963 = vpow2.f32 %v641_v47  ;;  %v621_v34 = vsub.f32 %v2435_v35, %v600_v2 }
 0x45b   :  { %1965 = vpow2.f32 %v635_v50 }
 0x45c   :  { %665 = vadd.xlane.f32.xlu0 %v2483_v8  ;;  %v2486_v10 = vpop.eup %1959  ;;  %v645_v55 = vmul.f32 1.442695, %v620_v48  ;;  %v647_v28 = vmul.f32 1.442695, %v621_v34 }
 0x45d   :  { %v604_v11 = vpop.xlane.xlu1 %603  ;;  %v602_v17 = vpop.xlane.xlu0 %601  ;;  %663 = vadd.xlane.f32.xlu1 %v2486_v10 }
 0x45e   :  { %v622_v61 = vsub.f32 %v2445_v45, %v602_v17  ;;  %1967 = vpow2.f32 %v645_v55  ;;  %v623_v9 = vsub.f32 %v2447_v46, %v604_v11 }
 0x460   :  { %v649_v27 = vmul.f32 1.442695, %v622_v61  ;;  %v2502_v3 = vpop.eup %1961  ;;  %v651_v13 = vmul.f32 1.442695, %v623_v9 }
 0x461   :  { %v608_v18 = vpop.xlane.xlu1 %607  ;;  %v606_v19 = vpop.xlane.xlu0 %605 }
 0x462   :  { %v624_v16 = vsub.f32 %v2457_v52, %v606_v19  ;;  %v625_v22 = vsub.f32 %v2459_v53, %v608_v18 }
 0x464   :  { %v653_v6 = vmul.f32 1.442695, %v624_v16  ;;  %v2506_v45 = vpop.eup %1963  ;;  %v655_v12 = vmul.f32 1.442695, %v625_v22 }
 0x465   :  { %v1935_v20 = vpop.permute.xlu1 %1934  ;;  %v610_v23 = vpop.xlane.xlu0 %609 }
 0x466   :  { %v1937_v24 = vunpack.i.h.bf16 %v1935_v20  ;;  %v1936_v25 = vunpack.i.l.bf16 %v1935_v20  ;;  %v2510_v52 = vpop.eup %1965  ;;  %v626_v35 = vsub.f32 %v2466_v60, %v610_v23 }
 0x468   :  { %v1780_v26 = vpack.c.bf16 %v1937_v24, %v1936_v25  ;;  %v2514_v53 = vpop.eup %1967  ;;  %v657_v46 = vmul.f32 1.442695, %v626_v35 }
 0x469   :  { %v1940_v29 = vpop.permute.xlu0 %1939 }
 0x46a   :  { %v1942_v30 = vunpack.i.h.bf16 %v1940_v29  ;;  %v1941_v31 = vunpack.i.l.bf16 %v1940_v29  ;;  %1781 = vmatprep.subr.bf16.mxu1 %v1780_v26 }
 0x46b   :  { %1783 = vmatpush3.bf16.msra.mxu1 %v1780_v26 }
 0x46c   :  { %v1784_v33 = vpack.c.bf16 %v1942_v30, %v1941_v31 }
 0x46e   :  { %1785 = vmatprep.subr.bf16.mxu1 %v1784_v33  ;;  %1944 = vrot.lane.b32.xlu1 %v2231_v54, %s2063_s21  ;;  %s1374_s21 = sshll.u32 %s2073_s20, 4  ;;  %s1375_s21 = int_to_ptr.vmem [resolvable:$true] %s1374_s21 }
 0x46f   :  { %1787 = vmatpush3.bf16.msra.mxu1 %v1784_v33  ;;  %s2033_s14 = scalar_lea.vmem %s1375_s21, 256  ;;  %p2038_p1 = scmp.lt.s32.totalorder %s1375_s21, %s1375_s21 }
 0x470   :  { %p2034_p0 = scmp.ne.s32.totalorder %s1375_s21, %s2033_s14  ;;  %p2039_p2 = scmp.lt.s32.totalorder %s2033_s14, %s2033_s14 }
 0x472   :  { %1949 = vrot.lane.b32.xlu0 %v2231_v54, %s2064_s22  ;;  %v639_v54 = vmul.f32 1.442695, %v617_v51  ;;  %s2066_s22 = smov 8   ;;  %p2040_p3 = por %p2039_p2, %p2038_p1 }
 0x474   :  { %1969 = vpow2.f32 %v639_v54  ;;  %p2041_p4 = pnand %p2040_p3, %p2034_p0 }
 0x475   :  { %1971 = vpow2.f32 %v649_v27 }
 0x476   :  { %1973 = vpow2.f32 %v643_v0 }
 0x477   :  { %1975 = vpow2.f32 %v653_v6 }
 0x478   :  { %1977 = vpow2.f32 %v647_v28 }
 0x479   :  { %1979 = vpow2.f32 %v655_v12 }
 0x47a   :  { %1981 = vpow2.f32 %v651_v13 }
 0x47b   :  { %1983 = vpow2.f32 %v657_v46 }
 0x47e   :  { %v2517_v14 = vpop.eup %1969 }
 0x47f   :  { %v2520_v15 = vpop.eup %1971 }
 0x480   :  { %v2523_v60 = vpop.eup %1973 }
 0x481   :  { %v2526_v49 = vpop.eup %1975 }
 0x482   :  { %v2529_v56 = vpop.eup %1977 }
 0x483   :  { %v2532_v57 = vpop.eup %1979 }
 0x484   :  { %v2535_v59 = vpop.eup %1981 }
 0x485   :  { %v2538_v63 = vpop.eup %1983 }
 0x491   :  { %669 = vadd.xlane.f32.xlu0 %v2502_v3 }
 0x492   :  { %673 = vadd.xlane.f32.xlu1 %v2506_v45 }
 0x495   :  { %667 = vadd.xlane.f32.xlu0 %v2510_v52 }
 0x496   :  { %677 = vadd.xlane.f32.xlu1 %v2514_v53 }
 0x499   :  { %671 = vadd.xlane.f32.xlu0 %v2517_v14 }
 0x49a   :  { %681 = vadd.xlane.f32.xlu1 %v2520_v15 }
 0x49d   :  { %675 = vadd.xlane.f32.xlu0 %v2523_v60 }
 0x49e   :  { %685 = vadd.xlane.f32.xlu1 %v2526_v49 }
 0x4a1   :  { %679 = vadd.xlane.f32.xlu0 %v2529_v56 }
 0x4a2   :  { %687 = vadd.xlane.f32.xlu1 %v2532_v57 }
 0x4a5   :  { %683 = vadd.xlane.f32.xlu0 %v2535_v59 }
 0x4a6   :  { %689 = vadd.xlane.f32.xlu1 %v2538_v63 }
 0x4e1   :  { %v662_v1 = vpop.xlane.xlu0 %661 }
 0x4e5   :  { %v660_v62 = vpop.xlane.xlu0 %659 }
 0x4e6   :  { %1985 = vrcp.f32 %v660_v62 }
 0x4e7   :  { %1987 = vrcp.f32 %v662_v1 }
 0x4e9   :  { %v666_v4 = vpop.xlane.xlu0 %665 }
 0x4ea   :  { %v664_v2 = vpop.xlane.xlu1 %663 }
 0x4eb   :  { %1989 = vrcp.f32 %v664_v2 }
 0x4ec   :  { %1991 = vrcp.f32 %v666_v4 }
 0x4ed   :  { %v1950_v7 = vpop.permute.xlu0 %1949 }
 0x4ee   :  { %v1945_v11 = vpop.permute.xlu1 %1944  ;;  %v1952_v18 = vunpack.i.h.bf16 %v1950_v7  ;;  %v1951_v19 = vunpack.i.l.bf16 %v1950_v7 }
 0x4ef   :  { %v1947_v20 = vunpack.i.h.bf16 %v1945_v11  ;;  %v1946_v23 = vunpack.i.l.bf16 %v1945_v11  ;;  %v945_v11 = vld [vmem:[%s2817_s4 + $0x10] sm:$0xff] }
 0x4f0   :  { %v1986_v17 = vpop.eup %1985  ;;  %v1792_v26 = vpack.c.bf16 %v1952_v18, %v1951_v19  ;;  %v947_v19 = vld [vmem:[%s2817_s4 + $0x20] sm:$0xff] }
 0x4f1   :  { %v692_v24 = vmul.f32 %v1986_v17, %v2480_v5  ;;  %v1788_v25 = vpack.c.bf16 %v1947_v20, %v1946_v23  ;;  %v1988_v29 = vpop.eup %1987  ;;  %v946_v17 = vld [vmem:[%s2817_s4 + $0x18] sm:$0xff]  ;;  %v948_v20 = vld [vmem:[%s2817_s4 + $0x28] sm:$0xff] }
 0x4f2   :  { %v694_v31 = vmul.f32 %v1988_v29, %v2477_v58  ;;  %v1800_v18 = vpack.c.bf16 %v946_v17, %v945_v11  ;;  %v1804_v23 = vpack.c.bf16 %v948_v20, %v947_v19  ;;  %v949_v29 = vld [vmem:[%s2817_s4 + $0x30] sm:$0xff]  ;;  %v1084_v19 = vld [vmem:[%s2820_s7 + $0x18] sm:$0xff] }
 0x4f3   :  { %1649 = vmatprep.mubr.f32.mxu1 %v692_v24  ;;  %1789 = vmatprep.subr.bf16.mxu1 %v1788_v25 }
 0x4f4   :  { %1791 = vmatpush3.bf16.msra.mxu1 %v1788_v25 }
 0x4f5   :  { %1793 = vmatprep.subr.bf16.mxu1 %v1792_v26  ;;  %v1990_v30 = vpop.eup %1989 }
 0x4f6   :  { %v1992_v33 = vpop.eup %1991  ;;  %v696_v38 = vmul.f32 %v1990_v30, %v2486_v10  ;;  %v950_v30 = vld [vmem:[%s2817_s4 + $0x38] sm:$0xff] }
 0x4f7   :  { %v698_v41 = vmul.f32 %v1992_v33, %v2483_v8  ;;  %v1808_v33 = vpack.c.bf16 %v950_v30, %v949_v29  ;;  %v1088_v29 = vld [vmem:[%s2820_s7 + $0x38] sm:$0xff] }
 0x4f8   :  { %1795 = vmatpush3.bf16.msra.mxu1 %v1792_v26 }
 0x4fb   :  { %1650 = vmatmul.mubr.f32.vlgmr.msra.gmra.mrb[4].mxu1 %v694_v31 }
 0x4fc   :  { %1652 = vmatprep.mubr.f32.mxu1 %v696_v38 }
 0x4ff   :  { %1653 = vmatmul.mubr.f32.gmra.mrb[6].mxu1 %v698_v41 }
 0x51e   :  { %v670_v5 = vpop.xlane.xlu0 %669 }
 0x51f   :  { %v674_v42 = vpop.xlane.xlu1 %673  ;;  %1993 = vrcp.f32 %v670_v5 }
 0x522   :  { %v668_v44 = vpop.xlane.xlu0 %667 }
 0x523   :  { %1995 = vrcp.f32 %v668_v44  ;;  %v678_v47 = vpop.xlane.xlu1 %677 }
 0x524   :  { %1997 = vrcp.f32 %v674_v42 }
 0x526   :  { %v672_v48 = vpop.xlane.xlu0 %671 }
 0x527   :  { %1999 = vrcp.f32 %v672_v48  ;;  %v682_v50 = vpop.xlane.xlu1 %681 }
 0x528   :  { %2001 = vrcp.f32 %v678_v47 }
 0x529   :  { %v1994_v51 = vpop.eup %1993 }
 0x52a   :  { %v676_v58 = vpop.xlane.xlu0 %675  ;;  %v702_v54 = vmul.f32 %v1994_v51, %v2502_v3 }
 0x52b   :  { %2003 = vrcp.f32 %v676_v58  ;;  %v686_v10 = vpop.xlane.xlu1 %685 }
 0x52c   :  { %2005 = vrcp.f32 %v682_v50 }
 0x52d   :  { %v1996_v55 = vpop.eup %1995 }
 0x52e   :  { %v680_v61 = vpop.xlane.xlu0 %679  ;;  %v700_v8 = vmul.f32 %v1996_v55, %v2510_v52  ;;  %v1998_v21 = vpop.eup %1997 }
 0x52f   :  { %2007 = vrcp.f32 %v680_v61  ;;  %v688_v27 = vpop.xlane.xlu1 %687  ;;  %v706_v22 = vmul.f32 %v1998_v21, %v2506_v45 }
 0x530   :  { %1655 = vmatprep.mubr.f32.mxu1 %v700_v8  ;;  %2009 = vrcp.f32 %v686_v10 }
 0x531   :  { %v2000_v16 = vpop.eup %1999  ;;  %1656 = vmatmul.mubr.f32.gmra.mrb[8].mxu1 %v702_v54  ;;  %2011 = vrcp.f32 %v688_v27 }
 0x532   :  { %v684_v0 = vpop.xlane.xlu0 %683  ;;  %v704_v34 = vmul.f32 %v2000_v16, %v2517_v14  ;;  %v2002_v6 = vpop.eup %2001 }
 0x533   :  { %2013 = vrcp.f32 %v684_v0  ;;  %v690_v28 = vpop.xlane.xlu1 %689  ;;  %v710_v52 = vmul.f32 %v2002_v6, %v2514_v53 }
 0x534   :  { %1658 = vmatprep.mubr.f32.mxu1 %v704_v34  ;;  %2015 = vrcp.f32 %v690_v28 }
 0x535   :  { %v2004_v9 = vpop.eup %2003  ;;  %1659 = vmatmul.mubr.f32.gmra.mrb[10].mxu1 %v706_v22 }
 0x536   :  { %v708_v3 = vmul.f32 %v2004_v9, %v2523_v60  ;;  %v2006_v12 = vpop.eup %2005 }
 0x537   :  { %v714_v46 = vmul.f32 %v2006_v12, %v2520_v15  ;;  %v943_v15 = vld [vmem:[%s2817_s4] sm:$0xff] }
 0x538   :  { %1661 = vmatprep.mubr.f32.mxu1 %v708_v3 }
 0x539   :  { %v2008_v35 = vpop.eup %2007  ;;  %1662 = vmatmul.mubr.f32.gmra.mrb[12].mxu1 %v710_v52 }
 0x53a   :  { %v712_v13 = vmul.f32 %v2008_v35, %v2529_v56  ;;  %v2010_v14 = vpop.eup %2009  ;;  %v944_v56 = vld [vmem:[%s2817_s4 + $0x8] sm:$0xff]  ;;  %s2071_s4 = smov 48  }
 0x53b   :  { %v2012_v45 = vpop.eup %2011  ;;  %v718_v4 = vmul.f32 %v2010_v14, %v2526_v49 }
 0x53c   :  { %1664 = vmatprep.mubr.f32.mxu1 %v712_v13  ;;  %v720_v53 = vmul.f32 %v2012_v45, %v2532_v57 }
 0x53d   :  { %v2014_v1 = vpop.eup %2013  ;;  %1665 = vmatmul.mubr.f32.gmra.mrb[14].mxu1 %v714_v46 }
 0x53e   :  { %v716_v62 = vmul.f32 %v2014_v1, %v2535_v59  ;;  %v2016_v60 = vpop.eup %2015  ;;  %v1796_v59 = vpack.c.bf16 %v944_v56, %v943_v15 }
 0x53f   :  { %v722_v2 = vmul.f32 %v2016_v60, %v2538_v63 }
 0x540   :  { %1667 = vmatprep.mubr.f32.mxu1 %v716_v62  ;;  %1797 = vmatprep.subr.bf16.mxu1 %v1796_v59 }
 0x541   :  { %1668 = vmatmul.mubr.f32.gmra.mrb[16].mxu1 %v718_v4 }
 0x542   :  { %1670 = vmatprep.mubr.f32.mxu1 %v720_v53  ;;  %1799 = vmatpush3.bf16.msra.mxu1 %v1796_v59  ;;  %v1422_v53 = vld [vmem:[%s2818_s5 + $0x1] ss:$0 sm:$0xff] }
 0x543   :  { %1801 = vmatprep.subr.bf16.mxu1 %v1800_v18 }
 0x545   :  { %1671 = vmatmul.mubr.f32.gmra.mrb[18].mxu1 %v722_v2 }
 0x546   :  { %1803 = vmatpush3.bf16.msra.mxu1 %v1800_v18 }
 0x547   :  { %1805 = vmatprep.subr.bf16.mxu1 %v1804_v23 }
 0x54a   :  { %1807 = vmatpush3.bf16.msra.mxu1 %v1804_v23  ;;  %v1081_v23 = vld [vmem:[%s2820_s7] sm:$0xff] }
 0x54b   :  { %1809 = vmatprep.subr.bf16.mxu1 %v1808_v33 }
 0x54e   :  { %1811 = vmatpush3.bf16.msra.mxu1 %v1808_v33  ;;  %v1087_v33 = vld [vmem:[%s2820_s7 + $0x30] sm:$0xff] }
 0x5ce   :  { %v2563_v49 = vpop.f32.mrb[4].mxu1 }
 0x5cf   :  { %v2565_v7 = vpop.f32.mrb[5].mxu1 }
 0x5d2   :  { %v1654_v57 = vpop.f32.mrb[6].mxu1 }
 0x5d3   :  { %872 = vrot.lane.b32.xlu0 %v1654_v57, %s2066_s22  ;;  %v799_v63 = vpop.f32.mrb[7].mxu1 }
 0x5d4   :  { %870 = vrot.lane.b32.xlu1 %v799_v63, %s2066_s22 }
 0x604   :  { %v1657_v24 = vpop.f32.mrb[8].mxu1 }
 0x605   :  { %880 = vrot.lane.b32.xlu1 %v1657_v24, %s2067_s24  ;;  %v809_v25 = vpop.f32.mrb[9].mxu1  ;;  %v1083_v24 = vld [vmem:[%s2820_s7 + $0x10] sm:$0xff] }
 0x608   :  { %v1660_v26 = vpop.f32.mrb[10].mxu1 }
 0x609   :  { %878 = vrot.lane.b32.xlu1 %v809_v25, %s2067_s24  ;;  %888 = vrot.lane.b32.xlu0 %v1660_v26, %s2068_s1  ;;  %v819_v31 = vpop.f32.mrb[11].mxu1  ;;  %v1814_v25 = vpack.c.bf16 %v1083_v24, %v1081_v23  ;;  %v1086_v26 = vld [vmem:[%s2820_s7 + $0x28] sm:$0xff] }
 0x60a   :  { %v1816_v30 = vpack.c.bf16 %v1088_v29, %v1086_v26 }
 0x60c   :  { %v1663_v38 = vpop.f32.mrb[12].mxu1 }
 0x60d   :  { %886 = vrot.lane.b32.xlu1 %v819_v31, %s2068_s1  ;;  %896 = vrot.lane.b32.xlu0 %v1663_v38, %s2069_s29  ;;  %v829_v41 = vpop.f32.mrb[13].mxu1  ;;  %v1085_v31 = vld [vmem:[%s2820_s7 + $0x20] sm:$0xff] }
 0x60e   :  { %v1818_v38 = vpack.c.bf16 %v1087_v33, %v1085_v31  ;;  %v1234_v31 = vld [vmem:[%s2822_s9 + $0xb0] sm:$0xff] }
 0x610   :  { %v1666_v5 = vpop.f32.mrb[14].mxu1 }
 0x611   :  { %894 = vrot.lane.b32.xlu1 %v829_v41, %s2069_s29  ;;  %904 = vrot.lane.b32.xlu0 %v1666_v5, %s2070_s30  ;;  %v839_v42 = vpop.f32.mrb[15].mxu1  ;;  %v1090_v41 = vld [vmem:[%s2820_s7 + $0x48] sm:$0xff]  ;;  %v1092_v5 = vld [vmem:[%s2820_s7 + $0x58] sm:$0xff] }
 0x614   :  { %v1669_v44 = vpop.f32.mrb[16].mxu1 }
 0x615   :  { %902 = vrot.lane.b32.xlu1 %v839_v42, %s2070_s30  ;;  %912 = vrot.lane.b32.xlu0 %v1669_v44, %s2071_s4  ;;  %v849_v47 = vpop.f32.mrb[17].mxu1  ;;  %v1820_v42 = vpack.c.bf16 %v1092_v5, %v1090_v41  ;;  %v1089_v44 = vld [vmem:[%s2820_s7 + $0x40] sm:$0xff] }
 0x616   :  { %v1236_v5 = vld [vmem:[%s2822_s9 + $0xc0] sm:$0xff] }
 0x618   :  { %v1672_v48 = vpop.f32.mrb[18].mxu1 }
 0x619   :  { %910 = vrot.lane.b32.xlu1 %v849_v47, %s2071_s4  ;;  %920 = vrot.lane.b32.xlu0 %v1672_v48, %s2072_s11  ;;  %v859_v50 = vpop.f32.mrb[19].mxu1  ;;  %v1091_v47 = vld [vmem:[%s2820_s7 + $0x50] sm:$0xff] }
 0x61a   :  { %v1822_v48 = vpack.c.bf16 %v1091_v47, %v1089_v44  ;;  %v1220_v47 = vld [vmem:[%s2822_s9 + $0x40] sm:$0xff] }
 0x61d   :  { %918 = vrot.lane.b32.xlu1 %v859_v50, %s2072_s11  ;;  %v1094_v50 = vld [vmem:[%s2820_s7 + $0x68] sm:$0xff] }
 0x645   :  { %v873_v51 = vpop.permute.xlu0 %872 }
 0x646   :  { %v871_v58 = vpop.permute.xlu1 %870  ;;  %v925_v22 = vsel %vm369_vm2, %v2563_v49, %v873_v51 }
 0x647   :  { %v924_v34 = vsel %vm369_vm2, %v2565_v7, %v871_v58  ;;  %v1096_v58 = vld [vmem:[%s2820_s7 + $0x78] sm:$0xff] }
 0x648   :  { %v1824_v51 = vpack.c.bf16 %v1096_v58, %v1094_v50  ;;  %v1238_v58 = vld [vmem:[%s2822_s9 + $0xd0] sm:$0xff] }
 0x677   :  { %v881_v10 = vpop.permute.xlu1 %880 }
 0x678   :  { %v928_v9 = vsel %vm926_vm4, %v925_v22, %v881_v10  ;;  %v1093_v10 = vld [vmem:[%s2820_s7 + $0x60] sm:$0xff] }
 0x67b   :  { %v879_v55 = vpop.permute.xlu1 %878  ;;  %v889_v61 = vpop.permute.xlu0 %888 }
 0x67c   :  { %v927_v6 = vsel %vm926_vm4, %v924_v34, %v879_v55  ;;  %v931_v52 = vsel %vm929_vm5, %v928_v9, %v889_v61  ;;  %v1095_v55 = vld [vmem:[%s2820_s7 + $0x70] sm:$0xff]  ;;  %v1231_v34 = vld [vmem:[%s2822_s9 + $0x98] sm:$0xff] }
 0x67d   :  { %v1826_v61 = vpack.c.bf16 %v1095_v55, %v1093_v10  ;;  %v1215_v9 = vld [vmem:[%s2822_s9 + $0x18] sm:$0xff]  ;;  %v1222_v55 = vld [vmem:[%s2822_s9 + $0x50] sm:$0xff] }
 0x67f   :  { %v887_v8 = vpop.permute.xlu1 %886  ;;  %v897_v54 = vpop.permute.xlu0 %896 }
 0x680   :  { %v930_v3 = vsel %vm929_vm5, %v927_v6, %v887_v8  ;;  %v933_v35 = vsel %vm53_vm0, %v931_v52, %v897_v54  ;;  %v1228_v8 = vld [vmem:[%s2822_s9 + $0x80] sm:$0xff]  ;;  %v1229_v54 = vld [vmem:[%s2822_s9 + $0x88] sm:$0xff] }
 0x681   :  { %v1233_v52 = vld [vmem:[%s2822_s9 + $0xa8] sm:$0xff] }
 0x683   :  { %v895_v21 = vpop.permute.xlu1 %894  ;;  %v905_v27 = vpop.permute.xlu0 %904 }
 0x684   :  { %v932_v12 = vsel %vm53_vm0, %v930_v3, %v895_v21  ;;  %v936_v46 = vsel %vm934_vm6, %v933_v35, %v905_v27  ;;  %v1212_v21 = vld [vmem:[%s2822_s9] sm:$0xff]  ;;  %v1828_v27 = vpack.c.bf16 %v1229_v54, %v1228_v8 }
 0x685   :  { %v1232_v3 = vld [vmem:[%s2822_s9 + $0xa0] sm:$0xff] }
 0x686   :  { %1829 = vmatprep.subr.bf16.mxu0 %v1828_v27  ;;  %v1836_v35 = vpack.c.bf16 %v1233_v52, %v1232_v3  ;;  %v1240_v54 = vld [vmem:[%s2822_s9 + $0xe0] sm:$0xff]  ;;  %v1227_v3 = vld [vmem:[%s2822_s9 + $0x78] sm:$0xff] }
 0x687   :  { %v903_v16 = vpop.permute.xlu1 %902  ;;  %v913_v0 = vpop.permute.xlu0 %912 }
 0x688   :  { %v935_v13 = vsel %vm934_vm6, %v932_v12, %v903_v16  ;;  %v939_v62 = vsel %vm937_vm7, %v936_v46, %v913_v0  ;;  %v1213_v16 = vld [vmem:[%s2822_s9 + $0x8] sm:$0xff]  ;;  %v1230_v0 = vld [vmem:[%s2822_s9 + $0x90] sm:$0xff] }
 0x689   :  { %v1830_v22 = vpack.c.bf16 %v1213_v16, %v1212_v21  ;;  %v1832_v6 = vpack.c.bf16 %v1231_v34, %v1230_v0  ;;  %v1241_v21 = vld [vmem:[%s2822_s9 + $0xe8] sm:$0xff]  ;;  %v1224_v16 = vld [vmem:[%s2822_s9 + $0x60] sm:$0xff] }
 0x68a   :  { %v1852_v27 = vpack.c.bf16 %v1241_v21, %v1240_v54  ;;  %v1225_v0 = vld [vmem:[%s2822_s9 + $0x68] sm:$0xff] }
 0x68b   :  { %v911_v28 = vpop.permute.xlu1 %910  ;;  %v921_v14 = vpop.permute.xlu0 %920  ;;  %1831 = vmatpush3.bf16.msra.mxu0 %v1830_v22  ;;  %v1854_v34 = vpack.c.bf16 %v1225_v0, %v1224_v16  ;;  %v1242_v22 = vld [vmem:[%s2822_s9 + $0xf0] sm:$0xff] }
 0x68c   :  { %v938_v45 = vsel %vm937_vm7, %v935_v13, %v911_v28  ;;  %v942_v60 = vsel %vm940_vm8, %v939_v62, %v921_v14  ;;  %v1214_v28 = vld [vmem:[%s2822_s9 + $0x10] sm:$0xff]  ;;  %1833 = vmatprep.subr.bf16.mxu0 %v1832_v6  ;;  %v1216_v13 = vld [vmem:[%s2822_s9 + $0x20] sm:$0xff]  ;;  %v1217_v14 = vld [vmem:[%s2822_s9 + $0x28] sm:$0xff] }
 0x68d   :  { %v1834_v12 = vpack.c.bf16 %v1215_v9, %v1214_v28  ;;  %v1838_v46 = vpack.c.bf16 %v1217_v14, %v1216_v13  ;;  %v1243_v6 = vld [vmem:[%s2822_s9 + $0xf8] sm:$0xff]  ;;  %v1226_v9 = vld [vmem:[%s2822_s9 + $0x70] sm:$0xff] }
 0x68e   :  { %v1856_v28 = vpack.c.bf16 %v1243_v6, %v1242_v22  ;;  %v1858_v52 = vpack.c.bf16 %v1227_v3, %v1226_v9 }
 0x68f   :  { %v919_v1 = vpop.permute.xlu1 %918  ;;  %1835 = vmatpush3.bf16.msra.mxu0 %v1834_v12  ;;  %v1097_v12 = vld [vmem:[%s2821_s8] sm:$0x3] }
 0x690   :  { %v941_v4 = vsel %vm940_vm8, %v938_v45, %v919_v1  ;;  %1837 = vmatprep.subr.bf16.mxu0 %v1836_v35  ;;  %v1102_v35 = vrot.slane %v1097_v12, %v155_v40  ;;  %v1106_v13 = vrot.slane %v1097_v12, %v159_v43  ;;  %v1430_v12 = vld [vmem:[%s2818_s5 + $0x4] ss:$0 sm:$0xff] }
 0x691   :  { %1689 = vmatprep.mubr.msk.f32.mxu1 %vm163_vm1, %v941_v4 }
 0x692   :  { %1690 = vmatmul.mubr.msk.f32.vlgmr.msra.gmra.mrb[20].mxu1 %vm163_vm1, %v942_v60 }
 0x693   :  { %1179 = vmatprep.mubr.f32.mxu1 %v2057_v32  ;;  %1839 = vmatpush3.bf16.msra.mxu0 %v1838_v46 }
 0x765   :  { %v1691_v2 = vpop.f32.mrb[20].mxu1 }
 0x766   :  { %v1033_v15 = vadd.f32 %v1691_v2, %v1422_v53  ;;  %v1027_v56 = vpop.f32.mrb[21].mxu1 }
 0x767   :  { %v1028_v59 = vadd.f32 %v1422_v53, %v1027_v56 }
 0x768   :  { %v2600_v49 = vadd.f32 %v1033_v15, %v2207_v37  ;;  %v1082_v37 = vld [vmem:[%s2820_s7 + $0x8] sm:$0xff] }
 0x769   :  { %v2603_v7 = vadd.f32 %v1028_v59, %v2202_v36  ;;  %v1812_v20 = vpack.c.bf16 %v1084_v19, %v1082_v37  ;;  %v1425_v37 = vld [vmem:[%s2818_s5 + $0x2] ss:$0 sm:$0xff] }
 0x76a   :  { %v1048_v11 = vmul.f32 %v2600_v49, %v2600_v49  ;;  %v1041_v36 = vsel %vm163_vm1, %v2600_v49, 0.0 }
 0x76b   :  { %v1038_v57 = vsel %vm163_vm1, %v2603_v7, 0.0  ;;  %v1047_v63 = vmul.f32 %v2603_v7, %v2603_v7  ;;  %1813 = vmatprep.subr.bf16.mxu1 %v1812_v20  ;;  %v1426_v20 = vld [vmem:[%s2818_s5 + $0x3] ss:$0 sm:$0xff] }
 0x76c   :  { %1039 = vadd.xlane.f32.xlu1 %v1038_v57  ;;  %v1052_v18 = vsel %vm163_vm1, %v1048_v11, 0.0  ;;  %1815 = vmatpush1.bf16.msra.mxu1 %v1814_v25 }
 0x76d   :  { %v1049_v17 = vsel %vm163_vm1, %v1047_v63, 0.0  ;;  %1817 = vmatprep.subr.bf16.mxu1 %v1816_v30 }
 0x76e   :  { %1050 = vadd.xlane.f32.xlu0 %v1049_v17 }
 0x770   :  { %1053 = vadd.xlane.f32.xlu1 %v1052_v18  ;;  %1819 = vmatpush1.bf16.msra.mxu1 %v1818_v38  ;;  %v1218_v38 = vld [vmem:[%s2822_s9 + $0x30] sm:$0xff] }
 0x771   :  { %1821 = vmatprep.subr.bf16.mxu1 %v1820_v42  ;;  %v1237_v42 = vld [vmem:[%s2822_s9 + $0xc8] sm:$0xff] }
 0x772   :  { %1042 = vadd.xlane.f32.xlu0 %v1041_v36  ;;  %v1844_v44 = vpack.c.bf16 %v1237_v42, %v1236_v5 }
 0x774   :  { %1823 = vmatpush1.bf16.msra.mxu1 %v1822_v48  ;;  %v1221_v48 = vld [vmem:[%s2822_s9 + $0x48] sm:$0xff] }
 0x775   :  { %1825 = vmatprep.subr.bf16.mxu1 %v1824_v51  ;;  %v1846_v50 = vpack.c.bf16 %v1221_v48, %v1220_v47  ;;  %v1239_v51 = vld [vmem:[%s2822_s9 + $0xd8] sm:$0xff] }
 0x776   :  { %v1848_v10 = vpack.c.bf16 %v1239_v51, %v1238_v58 }
 0x778   :  { %1827 = vmatpush1.bf16.msra.mxu1 %v1826_v61  ;;  %v1223_v61 = vld [vmem:[%s2822_s9 + $0x58] sm:$0xff] }
 0x779   :  { %v1850_v8 = vpack.c.bf16 %v1223_v61, %v1222_v55 }
 0x7f9   :  { %v1040_v45 = vpop.xlane.xlu1 %1039 }
 0x7fa   :  { %v1045_v1 = vmul.f32 0.015625, %v1040_v45 }
 0x7fb   :  { %v1051_v62 = vpop.xlane.xlu0 %1050 }
 0x7fc   :  { %v1057_v4 = vmul.f32 %v1045_v1, %v1045_v1  ;;  %v1055_v60 = vmul.f32 0.015625, %v1051_v62  ;;  %v1061_v18 = vsub.f32 %v2603_v7, %v1045_v1 }
 0x7fd   :  { %v1054_v2 = vpop.xlane.xlu1 %1053 }
 0x7fe   :  { %v1059_v53 = vsub.f32 %v1055_v60, %v1057_v4  ;;  %v1056_v57 = vmul.f32 0.015625, %v1054_v2 }
 0x7ff   :  { %v1043_v15 = vpop.xlane.xlu0 %1042 }
 0x800   :  { %v1063_v56 = vadd.f32 1e-05, %v1059_v53  ;;  %v1046_v59 = vmul.f32 0.015625, %v1043_v15 }
 0x802   :  { %2017 = vrsqrt.f32 %v1063_v56  ;;  %v1058_v63 = vmul.f32 %v1046_v59, %v1046_v59  ;;  %v1062_v24 = vsub.f32 %v2600_v49, %v1046_v59  ;;  %v1235_v49 = vld [vmem:[%s2822_s9 + $0xb8] sm:$0xff] }
 0x803   :  { %v1840_v33 = vpack.c.bf16 %v1235_v49, %v1234_v31  ;;  %v1429_v31 = vld [vmem:[%s2818_s5 + $0x6] ss:$0 sm:$0xff] }
 0x804   :  { %v1060_v11 = vsub.f32 %v1056_v57, %v1058_v63 }
 0x805   :  { %1841 = vmatprep.subr.bf16.mxu0 %v1840_v33 }
 0x806   :  { %v1064_v17 = vadd.f32 1e-05, %v1060_v11 }
 0x808   :  { %2019 = vrsqrt.f32 %v1064_v17 }
 0x80c   :  { %v2018_v36 = vpop.eup %2017 }
 0x80d   :  { %v1067_v19 = vmul.f32 %v2018_v36, %v1061_v18 }
 0x80f   :  { %v1073_v23 = vmul.f32 %v1425_v37, %v1067_v19 }
 0x811   :  { %v2707_v25 = vadd.f32 %v1426_v20, %v1073_v23 }
 0x812   :  { %v2020_v26 = vpop.eup %2019 }
 0x813   :  { %v1068_v29 = vmul.f32 %v2020_v26, %v1062_v24  ;;  %1427 = vmatmul.mubr.msk.f32.vlgmr.msra.gmra.mrb[22].mxu1 %vm163_vm1, %v2707_v25 }
 0x814   :  { %1185 = vmatprep.mubr.f32.mxu1 %v2057_v32  ;;  %v1219_v32 = vld [vmem:[%s2822_s9 + $0x38] sm:$0xff] }
 0x815   :  { %v1074_v7 = vmul.f32 %v1425_v37, %v1068_v29  ;;  %v1842_v41 = vpack.c.bf16 %v1219_v32, %v1218_v38 }
 0x817   :  { %v2712_v30 = vadd.f32 %v1426_v20, %v1074_v7  ;;  %1843 = vmatpush3.bf16.msra.mxu0 %v1842_v41 }
 0x818   :  { %1845 = vmatprep.subr.bf16.mxu0 %v1844_v44 }
 0x819   :  { %1428 = vmatmul.mubr.msk.f32.gmra.mrb[24].mxu1 %vm163_vm1, %v2712_v30 }
 0x81b   :  { %1847 = vmatpush3.bf16.msra.mxu0 %v1846_v50 }
 0x81c   :  { %1849 = vmatprep.subr.bf16.mxu0 %v1848_v10 }
 0x81f   :  { %1851 = vmatpush3.bf16.msra.mxu0 %v1850_v8 }
 0x820   :  { %1853 = vmatprep.subr.bf16.mxu0 %v1852_v27 }
 0x823   :  { %1855 = vmatpush3.bf16.msra.mxu0 %v1854_v34 }
 0x824   :  { %1857 = vmatprep.subr.bf16.mxu0 %v1856_v28 }
 0x827   :  { %1859 = vmatpush3.bf16.msra.mxu0 %v1858_v52 }
 0x8e6   :  { %v1181_v14 = vpop.f32.mrb[22].mxu1 }
 0x8e7   :  { %v1182_v46 = vadd.f32 %v1181_v14, %v1102_v35  ;;  %v1183_v45 = vpop.f32.mrb[23].mxu1 }
 0x8e8   :  { %v1184_v1 = vadd.f32 %v1183_v45, %v1106_v13 }
 0x8e9   :  { %v1196_v62 = vmul.f32 0.70710677, %v1182_v46  ;;  %v1192_v11 = vmul.f32 0.5, %v1182_v46 }
 0x8ea   :  { %v1197_v4 = vmul.f32 0.70710677, %v1184_v1  ;;  %v1193_v43 = vmul.f32 0.5, %v1184_v1 }
 0x8eb   :  { %2021 = verf.f32 %v1196_v62 }
 0x8ec   :  { %2023 = verf.f32 %v1197_v4  ;;  %v1187_v60 = vpop.f32.mrb[24].mxu1 }
 0x8ed   :  { %v1188_v53 = vadd.f32 %v1187_v60, %v1102_v35  ;;  %v1189_v2 = vpop.f32.mrb[25].mxu1 }
 0x8ee   :  { %v1190_v15 = vadd.f32 %v1189_v2, %v1106_v13  ;;  %v1431_v13 = vld [vmem:[%s2818_s5 + $0x5] ss:$0 sm:$0xff] }
 0x8ef   :  { %v1198_v56 = vmul.f32 0.70710677, %v1188_v53  ;;  %v1194_v24 = vmul.f32 0.5, %v1188_v53 }
 0x8f0   :  { %v1199_v59 = vmul.f32 0.70710677, %v1190_v15  ;;  %v1195_v20 = vmul.f32 0.5, %v1190_v15 }
 0x8f1   :  { %2025 = verf.f32 %v1198_v56 }
 0x8f2   :  { %2027 = verf.f32 %v1199_v59 }
 0x8f5   :  { %v2022_v40 = vpop.eup %2021 }
 0x8f6   :  { %v2024_v57 = vpop.eup %2023  ;;  %v1204_v39 = vadd.f32 1.0, %v2022_v40 }
 0x8f7   :  { %v1205_v63 = vadd.f32 1.0, %v2024_v57 }
 0x8f8   :  { %v1208_v18 = vmul.f32 %v1204_v39, %v1192_v11 }
 0x8f9   :  { %v1209_v17 = vmul.f32 %v1205_v63, %v1193_v43 }
 0x8fb   :  { %v2026_v36 = vpop.eup %2025  ;;  %1312 = vmatprep.mubr.f32.mxu0 %v1209_v17 }
 0x8fc   :  { %v2028_v37 = vpop.eup %2027  ;;  %v1206_v19 = vadd.f32 1.0, %v2026_v36  ;;  %1313 = vmatmul.mubr.f32.vlgmr.msra.gmra.mrb[18].mxu0 %v1208_v18 }
 0x8fd   :  { %v1207_v23 = vadd.f32 1.0, %v2028_v37 }
 0x8fe   :  { %v1210_v29 = vmul.f32 %v1206_v19, %v1194_v24 }
 0x8ff   :  { %v1211_v26 = vmul.f32 %v1207_v23, %v1195_v20 }
 0x901   :  { %1317 = vmatprep.mubr.f32.mxu0 %v1211_v26 }
 0x902   :  { %1318 = vmatmul.mubr.f32.gmra.mrb[20].mxu0 %v1210_v29 }
 0x9cf   :  { %v1544_v7 = vpop.f32.mrb[18].mxu0 }
 0x9d0   :  { %v1545_v49 = vpop.f32.mrb[19].mxu0 }
 0x9d1   :  { %v1546_v33 = vadd.f32 %v1545_v49, %v1544_v7 }
 0x9d3   :  { %v1315_v38 = vadd.f32 %v1546_v33, %v1429_v31 }
 0x9d5   :  { %v1323_v32 = vadd.f32 %v1315_v38, %v2707_v25  ;;  %v1547_v41 = vpop.f32.mrb[20].mxu0 }
 0x9d6   :  { %v1548_v5 = vpop.f32.mrb[21].mxu0 }
 0x9d7   :  { %v1549_v42 = vadd.f32 %v1548_v5, %v1547_v41  ;;  %v1325_v44 = vsel %vm163_vm1, %v1323_v32, 0.0  ;;  %v1333_v47 = vmul.f32 %v1323_v32, %v1323_v32 }
 0x9d8   :  { %1326 = vadd.xlane.f32.xlu0 %v1325_v44 }
 0x9d9   :  { %v1320_v48 = vadd.f32 %v1549_v42, %v1429_v31  ;;  %v1335_v58 = vsel %vm163_vm1, %v1333_v47, 0.0 }
 0x9db   :  { %v1324_v50 = vadd.f32 %v1320_v48, %v2712_v30 }
 0x9dc   :  { %1336 = vadd.xlane.f32.xlu0 %v1335_v58 }
 0x9dd   :  { %v1328_v51 = vsel %vm163_vm1, %v1324_v50, 0.0  ;;  %v1334_v10 = vmul.f32 %v1324_v50, %v1324_v50 }
 0x9de   :  { %1329 = vadd.xlane.f32.xlu1 %v1328_v51 }
 0x9df   :  { %v1338_v55 = vsel %vm163_vm1, %v1334_v10, 0.0 }
 0x9e2   :  { %1339 = vadd.xlane.f32.xlu1 %v1338_v55 }
 0xa65   :  { %v1327_v25 = vpop.xlane.xlu0 %1326 }
 0xa66   :  { %v1331_v61 = vmul.f32 0.015625, %v1327_v25 }
 0xa68   :  { %v1343_v54 = vmul.f32 %v1331_v61, %v1331_v61  ;;  %v1347_v3 = vsub.f32 %v1323_v32, %v1331_v61 }
 0xa69   :  { %v1337_v8 = vpop.xlane.xlu0 %1336 }
 0xa6a   :  { %v1341_v21 = vmul.f32 0.015625, %v1337_v8 }
 0xa6b   :  { %v1330_v27 = vpop.xlane.xlu1 %1329 }
 0xa6c   :  { %v1345_v16 = vsub.f32 %v1341_v21, %v1343_v54  ;;  %v1332_v0 = vmul.f32 0.015625, %v1330_v27 }
 0xa6e   :  { %v1349_v34 = vadd.f32 1e-05, %v1345_v16  ;;  %v1344_v22 = vmul.f32 %v1332_v0, %v1332_v0  ;;  %v1348_v46 = vsub.f32 %v1324_v50, %v1332_v0 }
 0xa6f   :  { %v1340_v30 = vpop.xlane.xlu1 %1339 }
 0xa70   :  { %2029 = vrsqrt.f32 %v1349_v34  ;;  %v1342_v6 = vmul.f32 0.015625, %v1340_v30 }
 0xa72   :  { %v1346_v28 = vsub.f32 %v1342_v6, %v1344_v22 }
 0xa74   :  { %v1350_v9 = vadd.f32 1e-05, %v1346_v28 }
 0xa76   :  { %2031 = vrsqrt.f32 %v1350_v9 }
 0xa7a   :  { %v2030_v52 = vpop.eup %2029 }
 0xa7b   :  { %v1353_v35 = vmul.f32 %v2030_v52, %v1347_v3 }
 0xa7d   :  { %v1359_v14 = vmul.f32 %v1430_v12, %v1353_v35 }
 0xa7f   :  { %v1365_v45 = vadd.f32 %v1431_v13, %v1359_v14 }
 0xa80   :  { %v2032_v1 = vpop.eup %2031 }
 0xa81   :  { %v1354_v62 = vmul.f32 %v2032_v1, %v1348_v46  ;;  %1367 = vst.msk [vmem:[#allocation2] sm:$0xff] %vm163_vm1, %v1365_v45 }
 0xa83   :  { %v1360_v4 = vmul.f32 %v1430_v12, %v1354_v62 }
 0xa85   :  { %v1366_v60 = vadd.f32 %v1431_v13, %v1360_v4 }
 0xa87   :  { %1368 = vst.msk [vmem:[#allocation2 + $0x8] sm:$0xff] %vm163_vm1, %v1366_v60 }
 0xa88   :  { %2044 = shalt.err (!%p2041_p4)
}
 0xa89   :  { %s2045_s2 = scalar_lea.hbm %s2823_s10, 256 }
 0xa8a   :  { %p2046_p5 = scmp.ne.s32.totalorder %s2823_s10, %s2045_s2  ;;  %p2049_p6 = scmp.lt.u32.totalorder %s2045_s2, %s2823_s10 }
 0xa8c   :  { %p2051_p7 = pnand %p2049_p6, %p2046_p5 }
 0xa8e   :  { %2054 = shalt.err (!%p2051_p7)
}
 0xa8f   :  { %s2074_s23 = smov 128  }
 0xa90   :  { %1380 = dma.vmem_to_hbm [thread:$0]  %s1375_s21, 256, %s2823_s10, [#allocation3], %s2074_s23, %s2074_s23, %s2066_s22  }
 0xa91   :  { %2055 = dma.done.wait [#allocation3], 256  }
 0xa92   :  { %2056 = vsyncadd [#allocation3], 4294967040 }
 0xa93   :  { %1384 = vsyncpa [#allocation3], 1 }

</bundles_post_ra>
